<compile_context>
chip_gen: v5e
topology: v5e:2x2
jax: 0.10.0
libtpu: 0.0.40
codegen_flags: <defaults>
</compile_context>

<pallas_src>
import numpy as np

import jax
import jax.numpy as jnp
from jax.experimental import pallas as pl
from jax.experimental.pallas import tpu as pltpu

NEG_SLOPE = 0.2


# ---------------------------------------------------------------------------
# Fused kernel
# ---------------------------------------------------------------------------
def _encoder_kernel(x_ref,
                    sh1_ref, m1_ref, b1_ref,
                    sh2_ref, m2_ref, b2_ref,
                    sh3_ref, m3_ref, b3_ref,
                    sh4_ref, m4_ref, b4_ref,
                    wfc_ref, bfc_ref,
                    o_ref,
                    a1_ref, a2_ref, a3_ref, a4_ref):
    """One batch element per grid step; everything stays resident in VMEM."""

    def conv_lrelu(a_ref, sh_ref, m_ref, brow_ref):
        a = a_ref[...]                                    # (Hp, Hp*Cin), f32
        oh = sh_ref.shape[1]
        n = m_ref.shape[2]
        acc = jnp.zeros((oh, n), dtype=jnp.float32)
        for kh in range(4):                               # static unroll: 8 MXU ops
            rows = jnp.dot(sh_ref[kh], a,
                           preferred_element_type=jnp.float32)       # (OH, Hp*Cin)
            acc = acc + jnp.dot(rows, m_ref[kh],
                                preferred_element_type=jnp.float32)  # (OH, OW*Cout)
        acc = acc + brow_ref[...]                         # bias (f32 on VPU)
        return jnp.where(acc >= 0.0, acc, NEG_SLOPE * acc)  # LeakyReLU(0.2)

    # Zero the padded activation slabs -> establishes the conv zero padding.
    a1_ref[...] = jnp.zeros_like(a1_ref)
    a2_ref[...] = jnp.zeros_like(a2_ref)
    a3_ref[...] = jnp.zeros_like(a3_ref)
    a4_ref[...] = jnp.zeros_like(a4_ref)

    # Layer-1 input: x block is (H, W*nc); interior-first layout -> offset (0,0).
    h0, wc0 = x_ref.shape
    a1_ref[0:h0, 0:wc0] = x_ref[...]

    o1 = conv_lrelu(a1_ref, sh1_ref, m1_ref, b1_ref)      # (16, 128)
    a2_ref[0:o1.shape[0], 0:o1.shape[1]] = o1
    o2 = conv_lrelu(a2_ref, sh2_ref, m2_ref, b2_ref)      # (8, 128)
    a3_ref[0:o2.shape[0], 0:o2.shape[1]] = o2
    o3 = conv_lrelu(a3_ref, sh3_ref, m3_ref, b3_ref)      # (4, 128)
    a4_ref[0:o3.shape[0], 0:o3.shape[1]] = o3
    o4 = conv_lrelu(a4_ref, sh4_ref, m4_ref, b4_ref)      # (2, 128)

    # fc_out: the NCHW flatten order is already baked into wfc's rows, so the
    # FC is just two (1,128)x(128,E) matmuls over o4's two spatial rows.
    res = (jnp.dot(o4[0:1, :], wfc_ref[0], preferred_element_type=jnp.float32)
           + jnp.dot(o4[1:2, :], wfc_ref[1], preferred_element_type=jnp.float32)
           + bfc_ref[...])
    o_ref[...] = res.astype(o_ref.dtype)


# ---------------------------------------------------------------------------
# One-time host-side parameter preparation (feedback: hoist all layout work)
# ---------------------------------------------------------------------------
def _pad_slot(r, h):
    """Scratch slot for padded coordinate r: interior first, pad rows/cols last."""
    if r == 0:
        return h
    if r == h + 1:
        return h + 1
    return r - 1


def _prep_conv(w_oihw, b, h_in):
    """Fold Conv2d(k=4,s=2,p=1) into per-kh (row-select, tap-select*weight) mats."""
    w = np.asarray(w_oihw, dtype=np.float32)          # torch layout (Cout, Cin, 4, 4)
    cout, cin = int(w.shape[0]), int(w.shape[1])
    hp, oh = h_in + 2, h_in // 2                      # padded size, output size
    n = oh * cout                                     # = OW * Cout
    sh = np.zeros((4, oh, hp), dtype=np.float32)
    m = np.zeros((4, hp * cin, n), dtype=np.float32)
    for kh in range(4):
        for o in range(oh):                           # o: output row (SH) / col (M) index
            sh[kh, o, _pad_slot(2 * o + kh, h_in)] = 1.0
            for kw in range(4):
                r0 = _pad_slot(2 * o + kw, h_in) * cin
                m[kh, r0:r0 + cin, o * cout:(o + 1) * cout] += w[:, :, kh, kw].T
    brow = np.tile(np.asarray(b, dtype=np.float32), oh).reshape(1, n)
    return jnp.asarray(sh), jnp.asarray(m), jnp.asarray(brow)


def _prep_fc(fc_w, fc_b, c_last, hw_last):
    """Permute torch Linear weight (E, C*H*W) so it consumes rows of (H, W*C)."""
    w = np.asarray(fc_w, dtype=np.float32)
    e = int(w.shape[0])
    wr = w.reshape(e, c_last, hw_last, hw_last)                 # (E, C, H, W)
    wfc = np.transpose(wr, (2, 3, 1, 0)).reshape(hw_last, hw_last * c_last, e)
    bfc = np.asarray(fc_b, dtype=np.float32).reshape(1, e)
    return jnp.asarray(wfc), jnp.asarray(bfc)


def prepare_params(params, img_hw=32):
    prep = {"sh": [], "m": [], "brow": []}
    h = img_hw
    for i in range(1, 5):
        sh, m, brow = _prep_conv(params[f"conv{i}_w"], params[f"conv{i}_b"], h)
        prep["sh"].append(sh)
        prep["m"].append(m)
        prep["brow"].append(brow)
        h //= 2
    c_last = int(params["conv4_w"].shape[0])
    wfc, bfc = _prep_fc(params["fc_w"], params["fc_b"], c_last, h)
    prep["wfc"] = wfc
    prep["bfc"] = bfc
    return prep


# ---------------------------------------------------------------------------
# Forward wrapper
# ---------------------------------------------------------------------------
def encoder_forward(prep, x_nchw):
    """Fused Pallas forward.  x_nchw: (B, nc, H, W) -> (B, embed_dim)."""
    B, nc, H, W = x_nchw.shape
    assert H == W, "DCGAN encoder expects square inputs"
    E = prep["bfc"].shape[1]

    # Only layout op left in the forward path: NCHW -> (B, H, W*nc) rows.
    x2d = jnp.transpose(x_nchw, (0, 2, 3, 1)).reshape(B, H, W * nc)

    sh, m, brow = prep["sh"], prep["m"], prep["brow"]

    # Padded activation scratch per conv layer: (Hp, Hp*Cin), f32.
    scratch_shapes = []
    h, cin = H, nc
    for layer in range(4):
        hp = h + 2
        scratch_shapes.append(pltpu.VMEM((hp, hp * cin), jnp.float32))
        cout = m[layer].shape[2] // (h // 2)
        h, cin = h // 2, cout

    def _full(arr):
        nd = arr.ndim
        return pl.BlockSpec(tuple(arr.shape), lambda b, _n=nd: (0,) * _n)

    in_specs = [pl.BlockSpec((None, H, W * nc), lambda b: (b, 0, 0))]
    args = [x2d]
    for layer in range(4):
        for arr in (sh[layer], m[layer], brow[layer]):
            in_specs.append(_full(arr))
            args.append(arr)
    for arr in (prep["wfc"], prep["bfc"]):
        in_specs.append(_full(arr))
        args.append(arr)

    out = pl.pallas_call(
        _encoder_kernel,
        out_shape=jax.ShapeDtypeStruct((B, 1, E), jnp.float32),
        grid=(B,),
        in_specs=in_specs,
        out_specs=pl.BlockSpec((None, 1, E), lambda b: (b, 0, 0)),
        scratch_shapes=scratch_shapes,
        compiler_params=pltpu.CompilerParams(
            dimension_semantics=("parallel",)),
    )(*args)
    return out.reshape(B, E)


# ---------------------------------------------------------------------------
# Reference (pure JAX) and synthetic params
# ---------------------------------------------------------------------------
def encoder_reference(params, x_nchw):
    x = x_nchw
    for i in range(1, 5):
        w, b = params[f"conv{i}_w"], params[f"conv{i}_b"]
        x = jax.lax.conv_general_dilated(
            x, w, window_strides=(2, 2), padding=((1, 1), (1, 1)),
            dimension_numbers=("NCHW", "OIHW", "NCHW"),
            precision=jax.lax.Precision.HIGHEST)
        x = x + b.reshape(1, -1, 1, 1)
        x = jnp.where(x >= 0.0, x, NEG_SLOPE * x)
    flat = x.reshape(x.shape[0], -1)                      # NCHW flatten, torch order
    return jnp.dot(flat, params["fc_w"].T,
                   precision=jax.lax.Precision.HIGHEST) + params["fc_b"]


def init_params(key, nc, ndf, embed_dim):
    """Deterministic synthetic params, stored in PyTorch shapes."""
    ks = jax.random.split(key, 10)

    def w(kk, shape):
        return (0.05 * jax.random.normal(kk, shape)).astype(jnp.float32)

    return {
        "conv1_w": w(ks[0], (ndf,       nc,       4, 4)),
        "conv1_b": w(ks[1], (ndf,)),
        "conv2_w": w(ks[2], (ndf * 2,   ndf,      4, 4)),
        "conv2_b": w(ks[3], (ndf * 2,)),
        "conv3_w": w(ks[4], (ndf * 4,   ndf * 2,  4, 4)),
        "conv3_b": w(ks[5], (ndf * 4,)),
        "conv4_w": w(ks[6], (ndf * 8,   ndf * 4,  4, 4)),
        "conv4_b": w(ks[7], (ndf * 8,)),
        "fc_w":    w(ks[8], (embed_dim, ndf * 8 * 4)),    # torch Linear (out, in)
        "fc_b":    w(ks[9], (embed_dim,)),
    }


if __name__ == "__main__":
    nc, ndf, embed_dim = 3, 8, 32
    B, H, W = 2, 32, 32            # 32x32 is forced by fc_out's ndf*8*4 in-features

    key = jax.random.PRNGKey(0)
    k_params, k_x = jax.random.split(key)
    params = init_params(k_params, nc, ndf, embed_dim)
    x = jax.random.normal(k_x, (B, nc, H, W), dtype=jnp.float32)

    prep = prepare_params(params, img_hw=H)               # one-time weight prep
    fwd = jax.jit(encoder_forward)
    out = jax.block_until_ready(fwd(prep, x))
    assert out.shape == (B, embed_dim), out.shape
    assert bool(jnp.all(jnp.isfinite(out)))

    ref = jax.block_until_ready(jax.jit(encoder_reference)(params, x))
    np.testing.assert_allclose(np.asarray(out), np.asarray(ref),
                               rtol=2e-2, atol=1e-3)
    print("KERNEL_OK")
</pallas_src>

<mosaic_0001>
module attributes {stable_mosaic.version = 11 : i64} {
  func.func @_encoder_kernel(%arg0: i32, %arg1: memref<1x32x96xf32, #tpu.memory_space<vmem>>, %arg2: memref<4x16x34xf32, #tpu.memory_space<vmem>>, %arg3: memref<4x102x128xf32, #tpu.memory_space<vmem>>, %arg4: memref<1x128xf32, #tpu.memory_space<vmem>>, %arg5: memref<4x8x18xf32, #tpu.memory_space<vmem>>, %arg6: memref<4x144x128xf32, #tpu.memory_space<vmem>>, %arg7: memref<1x128xf32, #tpu.memory_space<vmem>>, %arg8: memref<4x4x10xf32, #tpu.memory_space<vmem>>, %arg9: memref<4x160x128xf32, #tpu.memory_space<vmem>>, %arg10: memref<1x128xf32, #tpu.memory_space<vmem>>, %arg11: memref<4x2x6xf32, #tpu.memory_space<vmem>>, %arg12: memref<4x192x128xf32, #tpu.memory_space<vmem>>, %arg13: memref<1x128xf32, #tpu.memory_space<vmem>>, %arg14: memref<2x128x32xf32, #tpu.memory_space<vmem>>, %arg15: memref<1x32xf32, #tpu.memory_space<vmem>>, %arg16: memref<1x1x32xf32, #tpu.memory_space<vmem>>, %arg17: memref<34x102xf32, #tpu.memory_space<vmem>>, %arg18: memref<18x144xf32, #tpu.memory_space<vmem>>, %arg19: memref<10x160xf32, #tpu.memory_space<vmem>>, %arg20: memref<6x192xf32, #tpu.memory_space<vmem>>) attributes {dimension_semantics = [#tpu.dimension_semantics<parallel>], iteration_bounds = array<i64: 2>, scalar_prefetch = 0 : i64, scratch_operands = 4 : i64, tpu.core_type = #tpu.core_type<tc>, window_params = [{transform_indices = @transform_0, window_bounds = array<i64: 1, 32, 96>}, {pipeline_mode = #tpu.pipeline_mode<synchronous>, transform_indices = @transform_1, window_bounds = array<i64: 4, 16, 34>}, {pipeline_mode = #tpu.pipeline_mode<synchronous>, transform_indices = @transform_2, window_bounds = array<i64: 4, 102, 128>}, {pipeline_mode = #tpu.pipeline_mode<synchronous>, transform_indices = @transform_3, window_bounds = array<i64: 1, 128>}, {pipeline_mode = #tpu.pipeline_mode<synchronous>, transform_indices = @transform_4, window_bounds = array<i64: 4, 8, 18>}, {pipeline_mode = #tpu.pipeline_mode<synchronous>, transform_indices = @transform_5, window_bounds = array<i64: 4, 144, 128>}, {pipeline_mode = #tpu.pipeline_mode<synchronous>, transform_indices = @transform_6, window_bounds = array<i64: 1, 128>}, {pipeline_mode = #tpu.pipeline_mode<synchronous>, transform_indices = @transform_7, window_bounds = array<i64: 4, 4, 10>}, {pipeline_mode = #tpu.pipeline_mode<synchronous>, transform_indices = @transform_8, window_bounds = array<i64: 4, 160, 128>}, {pipeline_mode = #tpu.pipeline_mode<synchronous>, transform_indices = @transform_9, window_bounds = array<i64: 1, 128>}, {pipeline_mode = #tpu.pipeline_mode<synchronous>, transform_indices = @transform_10, window_bounds = array<i64: 4, 2, 6>}, {pipeline_mode = #tpu.pipeline_mode<synchronous>, transform_indices = @transform_11, window_bounds = array<i64: 4, 192, 128>}, {pipeline_mode = #tpu.pipeline_mode<synchronous>, transform_indices = @transform_12, window_bounds = array<i64: 1, 128>}, {pipeline_mode = #tpu.pipeline_mode<synchronous>, transform_indices = @transform_13, window_bounds = array<i64: 2, 128, 32>}, {pipeline_mode = #tpu.pipeline_mode<synchronous>, transform_indices = @transform_14, window_bounds = array<i64: 1, 32>}, {transform_indices = @transform_15, window_bounds = array<i64: 1, 1, 32>}]} {
    %cst = arith.constant 0.000000e+00 : f32
    %0 = vector.broadcast %cst : f32 to vector<34x102xf32>
    %c0 = arith.constant 0 : index
    %c0_0 = arith.constant 0 : index
    %1 = vector.load %arg17[%c0, %c0_0] : memref<34x102xf32, #tpu.memory_space<vmem>>, vector<34x102xf32>
    tpu.vector_store %arg17[%c0, %c0_0], %0 {strides = array<i32>} : memref<34x102xf32, #tpu.memory_space<vmem>>, vector<34x102xf32>,
    %cst_1 = arith.constant 0.000000e+00 : f32
    %2 = vector.broadcast %cst_1 : f32 to vector<18x144xf32>
    %c0_2 = arith.constant 0 : index
    %c0_3 = arith.constant 0 : index
    %3 = vector.load %arg18[%c0_2, %c0_3] : memref<18x144xf32, #tpu.memory_space<vmem>>, vector<18x144xf32>
    tpu.vector_store %arg18[%c0_2, %c0_3], %2 {strides = array<i32>} : memref<18x144xf32, #tpu.memory_space<vmem>>, vector<18x144xf32>,
    %cst_4 = arith.constant 0.000000e+00 : f32
    %4 = vector.broadcast %cst_4 : f32 to vector<10x160xf32>
    %c0_5 = arith.constant 0 : index
    %c0_6 = arith.constant 0 : index
    %5 = vector.load %arg19[%c0_5, %c0_6] : memref<10x160xf32, #tpu.memory_space<vmem>>, vector<10x160xf32>
    tpu.vector_store %arg19[%c0_5, %c0_6], %4 {strides = array<i32>} : memref<10x160xf32, #tpu.memory_space<vmem>>, vector<10x160xf32>,
    %cst_7 = arith.constant 0.000000e+00 : f32
    %6 = vector.broadcast %cst_7 : f32 to vector<6x192xf32>
    %c0_8 = arith.constant 0 : index
    %c0_9 = arith.constant 0 : index
    %7 = vector.load %arg20[%c0_8, %c0_9] : memref<6x192xf32, #tpu.memory_space<vmem>>, vector<6x192xf32>
    tpu.vector_store %arg20[%c0_8, %c0_9], %6 {strides = array<i32>} : memref<6x192xf32, #tpu.memory_space<vmem>>, vector<6x192xf32>,
    %c0_10 = arith.constant 0 : index
    %c0_11 = arith.constant 0 : index
    %c0_12 = arith.constant 0 : index
    %8 = vector.load %arg1[%c0_10, %c0_11, %c0_12] : memref<1x32x96xf32, #tpu.memory_space<vmem>>, vector<1x32x96xf32>
    %9 = vector.shape_cast %8 : vector<1x32x96xf32> to vector<32x96xf32>
    %c0_13 = arith.constant 0 : index
    %c0_14 = arith.constant 0 : index
    %10 = vector.load %arg17[%c0_13, %c0_14] : memref<34x102xf32, #tpu.memory_space<vmem>>, vector<32x96xf32>
    tpu.vector_store %arg17[%c0_13, %c0_14], %9 {strides = array<i32>} : memref<34x102xf32, #tpu.memory_space<vmem>>, vector<32x96xf32>,
    %c0_15 = arith.constant 0 : index
    %c0_16 = arith.constant 0 : index
    %11 = vector.load %arg17[%c0_15, %c0_16] : memref<34x102xf32, #tpu.memory_space<vmem>>, vector<34x102xf32>
    %cst_17 = arith.constant 0.000000e+00 : f32
    %12 = vector.broadcast %cst_17 : f32 to vector<16x128xf32>
    %c0_18 = arith.constant 0 : index
    %c0_19 = arith.constant 0 : index
    %c0_20 = arith.constant 0 : index
    %13 = vector.load %arg2[%c0_18, %c0_19, %c0_20] : memref<4x16x34xf32, #tpu.memory_space<vmem>>, vector<1x16x34xf32>
    %14 = vector.shape_cast %13 : vector<1x16x34xf32> to vector<16x34xf32>
    %cst_21 = arith.constant dense<0.000000e+00> : vector<16x102xf32>
    %15 = tpu.matmul %14, %11, %cst_21 {dimension_numbers = #tpu.dot_dimension_numbers<[1], [0], [0], [1], [0, 0, 1, 1], [], []>} : vector<16x34xf32>, vector<34x102xf32>, vector<16x102xf32> -> vector<16x102xf32>
    %c0_22 = arith.constant 0 : index
    %c0_23 = arith.constant 0 : index
    %c0_24 = arith.constant 0 : index
    %16 = vector.load %arg3[%c0_22, %c0_23, %c0_24] : memref<4x102x128xf32, #tpu.memory_space<vmem>>, vector<1x102x128xf32>
    %17 = vector.shape_cast %16 : vector<1x102x128xf32> to vector<102x128xf32>
    %cst_25 = arith.constant dense<0.000000e+00> : vector<16x128xf32>
    %18 = tpu.matmul %15, %17, %cst_25 {dimension_numbers = #tpu.dot_dimension_numbers<[1], [0], [0], [1], [0, 0, 1, 1], [], []>} : vector<16x102xf32>, vector<102x128xf32>, vector<16x128xf32> -> vector<16x128xf32>
    %19 = arith.addf %12, %18 : vector<16x128xf32>
    %c1 = arith.constant 1 : index
    %c0_26 = arith.constant 0 : index
    %c0_27 = arith.constant 0 : index
    %20 = vector.load %arg2[%c1, %c0_26, %c0_27] : memref<4x16x34xf32, #tpu.memory_space<vmem>>, vector<1x16x34xf32>
    %21 = vector.shape_cast %20 : vector<1x16x34xf32> to vector<16x34xf32>
    %cst_28 = arith.constant dense<0.000000e+00> : vector<16x102xf32>
    %22 = tpu.matmul %21, %11, %cst_28 {dimension_numbers = #tpu.dot_dimension_numbers<[1], [0], [0], [1], [0, 0, 1, 1], [], []>} : vector<16x34xf32>, vector<34x102xf32>, vector<16x102xf32> -> vector<16x102xf32>
    %c1_29 = arith.constant 1 : index
    %c0_30 = arith.constant 0 : index
    %c0_31 = arith.constant 0 : index
    %23 = vector.load %arg3[%c1_29, %c0_30, %c0_31] : memref<4x102x128xf32, #tpu.memory_space<vmem>>, vector<1x102x128xf32>
    %24 = vector.shape_cast %23 : vector<1x102x128xf32> to vector<102x128xf32>
    %cst_32 = arith.constant dense<0.000000e+00> : vector<16x128xf32>
    %25 = tpu.matmul %22, %24, %cst_32 {dimension_numbers = #tpu.dot_dimension_numbers<[1], [0], [0], [1], [0, 0, 1, 1], [], []>} : vector<16x102xf32>, vector<102x128xf32>, vector<16x128xf32> -> vector<16x128xf32>
    %26 = arith.addf %19, %25 : vector<16x128xf32>
    %c2 = arith.constant 2 : index
    %c0_33 = arith.constant 0 : index
    %c0_34 = arith.constant 0 : index
    %27 = vector.load %arg2[%c2, %c0_33, %c0_34] : memref<4x16x34xf32, #tpu.memory_space<vmem>>, vector<1x16x34xf32>
    %28 = vector.shape_cast %27 : vector<1x16x34xf32> to vector<16x34xf32>
    %cst_35 = arith.constant dense<0.000000e+00> : vector<16x102xf32>
    %29 = tpu.matmul %28, %11, %cst_35 {dimension_numbers = #tpu.dot_dimension_numbers<[1], [0], [0], [1], [0, 0, 1, 1], [], []>} : vector<16x34xf32>, vector<34x102xf32>, vector<16x102xf32> -> vector<16x102xf32>
    %c2_36 = arith.constant 2 : index
    %c0_37 = arith.constant 0 : index
    %c0_38 = arith.constant 0 : index
    %30 = vector.load %arg3[%c2_36, %c0_37, %c0_38] : memref<4x102x128xf32, #tpu.memory_space<vmem>>, vector<1x102x128xf32>
    %31 = vector.shape_cast %30 : vector<1x102x128xf32> to vector<102x128xf32>
    %cst_39 = arith.constant dense<0.000000e+00> : vector<16x128xf32>
    %32 = tpu.matmul %29, %31, %cst_39 {dimension_numbers = #tpu.dot_dimension_numbers<[1], [0], [0], [1], [0, 0, 1, 1], [], []>} : vector<16x102xf32>, vector<102x128xf32>, vector<16x128xf32> -> vector<16x128xf32>
    %33 = arith.addf %26, %32 : vector<16x128xf32>
    %c3 = arith.constant 3 : index
    %c0_40 = arith.constant 0 : index
    %c0_41 = arith.constant 0 : index
    %34 = vector.load %arg2[%c3, %c0_40, %c0_41] : memref<4x16x34xf32, #tpu.memory_space<vmem>>, vector<1x16x34xf32>
    %35 = vector.shape_cast %34 : vector<1x16x34xf32> to vector<16x34xf32>
    %cst_42 = arith.constant dense<0.000000e+00> : vector<16x102xf32>
    %36 = tpu.matmul %35, %11, %cst_42 {dimension_numbers = #tpu.dot_dimension_numbers<[1], [0], [0], [1], [0, 0, 1, 1], [], []>} : vector<16x34xf32>, vector<34x102xf32>, vector<16x102xf32> -> vector<16x102xf32>
    %c3_43 = arith.constant 3 : index
    %c0_44 = arith.constant 0 : index
    %c0_45 = arith.constant 0 : index
    %37 = vector.load %arg3[%c3_43, %c0_44, %c0_45] : memref<4x102x128xf32, #tpu.memory_space<vmem>>, vector<1x102x128xf32>
    %38 = vector.shape_cast %37 : vector<1x102x128xf32> to vector<102x128xf32>
    %cst_46 = arith.constant dense<0.000000e+00> : vector<16x128xf32>
    %39 = tpu.matmul %36, %38, %cst_46 {dimension_numbers = #tpu.dot_dimension_numbers<[1], [0], [0], [1], [0, 0, 1, 1], [], []>} : vector<16x102xf32>, vector<102x128xf32>, vector<16x128xf32> -> vector<16x128xf32>
    %40 = arith.addf %33, %39 : vector<16x128xf32>
    %c0_47 = arith.constant 0 : index
    %c0_48 = arith.constant 0 : index
    %41 = vector.load %arg4[%c0_47, %c0_48] : memref<1x128xf32, #tpu.memory_space<vmem>>, vector<1x128xf32>
    %42 = vector.broadcast %41 : vector<1x128xf32> to vector<16x128xf32>
    %43 = arith.addf %40, %42 : vector<16x128xf32>
    %cst_49 = arith.constant 0.000000e+00 : f32
    %44 = vector.broadcast %cst_49 : f32 to vector<16x128xf32>
    %45 = arith.cmpf oge, %43, %44 : vector<16x128xf32>
    %cst_50 = arith.constant 2.000000e-01 : f32
    %46 = vector.broadcast %cst_50 : f32 to vector<16x128xf32>
    %47 = arith.mulf %46, %43 : vector<16x128xf32>
    %48 = arith.select %45, %43, %47 : vector<16x128xi1>, vector<16x128xf32>
    %c0_51 = arith.constant 0 : index
    %c0_52 = arith.constant 0 : index
    %49 = vector.load %arg18[%c0_51, %c0_52] : memref<18x144xf32, #tpu.memory_space<vmem>>, vector<16x128xf32>
    tpu.vector_store %arg18[%c0_51, %c0_52], %48 {strides = array<i32>} : memref<18x144xf32, #tpu.memory_space<vmem>>, vector<16x128xf32>,
    %c0_53 = arith.constant 0 : index
    %c0_54 = arith.constant 0 : index
    %50 = vector.load %arg18[%c0_53, %c0_54] : memref<18x144xf32, #tpu.memory_space<vmem>>, vector<18x144xf32>
    %cst_55 = arith.constant 0.000000e+00 : f32
    %51 = vector.broadcast %cst_55 : f32 to vector<8x128xf32>
    %c0_56 = arith.constant 0 : index
    %c0_57 = arith.constant 0 : index
    %c0_58 = arith.constant 0 : index
    %52 = vector.load %arg5[%c0_56, %c0_57, %c0_58] : memref<4x8x18xf32, #tpu.memory_space<vmem>>, vector<1x8x18xf32>
    %53 = vector.shape_cast %52 : vector<1x8x18xf32> to vector<8x18xf32>
    %cst_59 = arith.constant dense<0.000000e+00> : vector<8x144xf32>
    %54 = tpu.matmul %53, %50, %cst_59 {dimension_numbers = #tpu.dot_dimension_numbers<[1], [0], [0], [1], [0, 0, 1, 1], [], []>} : vector<8x18xf32>, vector<18x144xf32>, vector<8x144xf32> -> vector<8x144xf32>
    %c0_60 = arith.constant 0 : index
    %c0_61 = arith.constant 0 : index
    %c0_62 = arith.constant 0 : index
    %55 = vector.load %arg6[%c0_60, %c0_61, %c0_62] : memref<4x144x128xf32, #tpu.memory_space<vmem>>, vector<1x144x128xf32>
    %56 = vector.shape_cast %55 : vector<1x144x128xf32> to vector<144x128xf32>
    %cst_63 = arith.constant dense<0.000000e+00> : vector<8x128xf32>
    %57 = tpu.matmul %54, %56, %cst_63 {dimension_numbers = #tpu.dot_dimension_numbers<[1], [0], [0], [1], [0, 0, 1, 1], [], []>} : vector<8x144xf32>, vector<144x128xf32>, vector<8x128xf32> -> vector<8x128xf32>
    %58 = arith.addf %51, %57 : vector<8x128xf32>
    %c1_64 = arith.constant 1 : index
    %c0_65 = arith.constant 0 : index
    %c0_66 = arith.constant 0 : index
    %59 = vector.load %arg5[%c1_64, %c0_65, %c0_66] : memref<4x8x18xf32, #tpu.memory_space<vmem>>, vector<1x8x18xf32>
    %60 = vector.shape_cast %59 : vector<1x8x18xf32> to vector<8x18xf32>
    %cst_67 = arith.constant dense<0.000000e+00> : vector<8x144xf32>
    %61 = tpu.matmul %60, %50, %cst_67 {dimension_numbers = #tpu.dot_dimension_numbers<[1], [0], [0], [1], [0, 0, 1, 1], [], []>} : vector<8x18xf32>, vector<18x144xf32>, vector<8x144xf32> -> vector<8x144xf32>
    %c1_68 = arith.constant 1 : index
    %c0_69 = arith.constant 0 : index
    %c0_70 = arith.constant 0 : index
    %62 = vector.load %arg6[%c1_68, %c0_69, %c0_70] : memref<4x144x128xf32, #tpu.memory_space<vmem>>, vector<1x144x128xf32>
    %63 = vector.shape_cast %62 : vector<1x144x128xf32> to vector<144x128xf32>
    %cst_71 = arith.constant dense<0.000000e+00> : vector<8x128xf32>
    %64 = tpu.matmul %61, %63, %cst_71 {dimension_numbers = #tpu.dot_dimension_numbers<[1], [0], [0], [1], [0, 0, 1, 1], [], []>} : vector<8x144xf32>, vector<144x128xf32>, vector<8x128xf32> -> vector<8x128xf32>
    %65 = arith.addf %58, %64 : vector<8x128xf32>
    %c2_72 = arith.constant 2 : index
    %c0_73 = arith.constant 0 : index
    %c0_74 = arith.constant 0 : index
    %66 = vector.load %arg5[%c2_72, %c0_73, %c0_74] : memref<4x8x18xf32, #tpu.memory_space<vmem>>, vector<1x8x18xf32>
    %67 = vector.shape_cast %66 : vector<1x8x18xf32> to vector<8x18xf32>
    %cst_75 = arith.constant dense<0.000000e+00> : vector<8x144xf32>
    %68 = tpu.matmul %67, %50, %cst_75 {dimension_numbers = #tpu.dot_dimension_numbers<[1], [0], [0], [1], [0, 0, 1, 1], [], []>} : vector<8x18xf32>, vector<18x144xf32>, vector<8x144xf32> -> vector<8x144xf32>
    %c2_76 = arith.constant 2 : index
    %c0_77 = arith.constant 0 : index
    %c0_78 = arith.constant 0 : index
    %69 = vector.load %arg6[%c2_76, %c0_77, %c0_78] : memref<4x144x128xf32, #tpu.memory_space<vmem>>, vector<1x144x128xf32>
    %70 = vector.shape_cast %69 : vector<1x144x128xf32> to vector<144x128xf32>
    %cst_79 = arith.constant dense<0.000000e+00> : vector<8x128xf32>
    %71 = tpu.matmul %68, %70, %cst_79 {dimension_numbers = #tpu.dot_dimension_numbers<[1], [0], [0], [1], [0, 0, 1, 1], [], []>} : vector<8x144xf32>, vector<144x128xf32>, vector<8x128xf32> -> vector<8x128xf32>
    %72 = arith.addf %65, %71 : vector<8x128xf32>
    %c3_80 = arith.constant 3 : index
    %c0_81 = arith.constant 0 : index
    %c0_82 = arith.constant 0 : index
    %73 = vector.load %arg5[%c3_80, %c0_81, %c0_82] : memref<4x8x18xf32, #tpu.memory_space<vmem>>, vector<1x8x18xf32>
    %74 = vector.shape_cast %73 : vector<1x8x18xf32> to vector<8x18xf32>
    %cst_83 = arith.constant dense<0.000000e+00> : vector<8x144xf32>
    %75 = tpu.matmul %74, %50, %cst_83 {dimension_numbers = #tpu.dot_dimension_numbers<[1], [0], [0], [1], [0, 0, 1, 1], [], []>} : vector<8x18xf32>, vector<18x144xf32>, vector<8x144xf32> -> vector<8x144xf32>
    %c3_84 = arith.constant 3 : index
    %c0_85 = arith.constant 0 : index
    %c0_86 = arith.constant 0 : index
    %76 = vector.load %arg6[%c3_84, %c0_85, %c0_86] : memref<4x144x128xf32, #tpu.memory_space<vmem>>, vector<1x144x128xf32>
    %77 = vector.shape_cast %76 : vector<1x144x128xf32> to vector<144x128xf32>
    %cst_87 = arith.constant dense<0.000000e+00> : vector<8x128xf32>
    %78 = tpu.matmul %75, %77, %cst_87 {dimension_numbers = #tpu.dot_dimension_numbers<[1], [0], [0], [1], [0, 0, 1, 1], [], []>} : vector<8x144xf32>, vector<144x128xf32>, vector<8x128xf32> -> vector<8x128xf32>
    %79 = arith.addf %72, %78 : vector<8x128xf32>
    %c0_88 = arith.constant 0 : index
    %c0_89 = arith.constant 0 : index
    %80 = vector.load %arg7[%c0_88, %c0_89] : memref<1x128xf32, #tpu.memory_space<vmem>>, vector<1x128xf32>
    %81 = vector.broadcast %80 : vector<1x128xf32> to vector<8x128xf32>
    %82 = arith.addf %79, %81 : vector<8x128xf32>
    %cst_90 = arith.constant 0.000000e+00 : f32
    %83 = vector.broadcast %cst_90 : f32 to vector<8x128xf32>
    %84 = arith.cmpf oge, %82, %83 : vector<8x128xf32>
    %cst_91 = arith.constant 2.000000e-01 : f32
    %85 = vector.broadcast %cst_91 : f32 to vector<8x128xf32>
    %86 = arith.mulf %85, %82 : vector<8x128xf32>
    %87 = arith.select %84, %82, %86 : vector<8x128xi1>, vector<8x128xf32>
    %c0_92 = arith.constant 0 : index
    %c0_93 = arith.constant 0 : index
    %88 = vector.load %arg19[%c0_92, %c0_93] : memref<10x160xf32, #tpu.memory_space<vmem>>, vector<8x128xf32>
    tpu.vector_store %arg19[%c0_92, %c0_93], %87 {strides = array<i32>} : memref<10x160xf32, #tpu.memory_space<vmem>>, vector<8x128xf32>,
    %c0_94 = arith.constant 0 : index
    %c0_95 = arith.constant 0 : index
    %89 = vector.load %arg19[%c0_94, %c0_95] : memref<10x160xf32, #tpu.memory_space<vmem>>, vector<10x160xf32>
    %cst_96 = arith.constant 0.000000e+00 : f32
    %90 = vector.broadcast %cst_96 : f32 to vector<4x128xf32>
    %c0_97 = arith.constant 0 : index
    %c0_98 = arith.constant 0 : index
    %c0_99 = arith.constant 0 : index
    %91 = vector.load %arg8[%c0_97, %c0_98, %c0_99] : memref<4x4x10xf32, #tpu.memory_space<vmem>>, vector<1x4x10xf32>
    %92 = vector.shape_cast %91 : vector<1x4x10xf32> to vector<4x10xf32>
    %cst_100 = arith.constant dense<0.000000e+00> : vector<4x160xf32>
    %93 = tpu.matmul %92, %89, %cst_100 {dimension_numbers = #tpu.dot_dimension_numbers<[1], [0], [0], [1], [0, 0, 1, 1], [], []>} : vector<4x10xf32>, vector<10x160xf32>, vector<4x160xf32> -> vector<4x160xf32>
    %c0_101 = arith.constant 0 : index
    %c0_102 = arith.constant 0 : index
    %c0_103 = arith.constant 0 : index
    %94 = vector.load %arg9[%c0_101, %c0_102, %c0_103] : memref<4x160x128xf32, #tpu.memory_space<vmem>>, vector<1x160x128xf32>
    %95 = vector.shape_cast %94 : vector<1x160x128xf32> to vector<160x128xf32>
    %cst_104 = arith.constant dense<0.000000e+00> : vector<4x128xf32>
    %96 = tpu.matmul %93, %95, %cst_104 {dimension_numbers = #tpu.dot_dimension_numbers<[1], [0], [0], [1], [0, 0, 1, 1], [], []>} : vector<4x160xf32>, vector<160x128xf32>, vector<4x128xf32> -> vector<4x128xf32>
    %97 = arith.addf %90, %96 : vector<4x128xf32>
    %c1_105 = arith.constant 1 : index
    %c0_106 = arith.constant 0 : index
    %c0_107 = arith.constant 0 : index
    %98 = vector.load %arg8[%c1_105, %c0_106, %c0_107] : memref<4x4x10xf32, #tpu.memory_space<vmem>>, vector<1x4x10xf32>
    %99 = vector.shape_cast %98 : vector<1x4x10xf32> to vector<4x10xf32>
    %cst_108 = arith.constant dense<0.000000e+00> : vector<4x160xf32>
    %100 = tpu.matmul %99, %89, %cst_108 {dimension_numbers = #tpu.dot_dimension_numbers<[1], [0], [0], [1], [0, 0, 1, 1], [], []>} : vector<4x10xf32>, vector<10x160xf32>, vector<4x160xf32> -> vector<4x160xf32>
    %c1_109 = arith.constant 1 : index
    %c0_110 = arith.constant 0 : index
    %c0_111 = arith.constant 0 : index
    %101 = vector.load %arg9[%c1_109, %c0_110, %c0_111] : memref<4x160x128xf32, #tpu.memory_space<vmem>>, vector<1x160x128xf32>
    %102 = vector.shape_cast %101 : vector<1x160x128xf32> to vector<160x128xf32>
    %cst_112 = arith.constant dense<0.000000e+00> : vector<4x128xf32>
    %103 = tpu.matmul %100, %102, %cst_112 {dimension_numbers = #tpu.dot_dimension_numbers<[1], [0], [0], [1], [0, 0, 1, 1], [], []>} : vector<4x160xf32>, vector<160x128xf32>, vector<4x128xf32> -> vector<4x128xf32>
    %104 = arith.addf %97, %103 : vector<4x128xf32>
    %c2_113 = arith.constant 2 : index
    %c0_114 = arith.constant 0 : index
    %c0_115 = arith.constant 0 : index
    %105 = vector.load %arg8[%c2_113, %c0_114, %c0_115] : memref<4x4x10xf32, #tpu.memory_space<vmem>>, vector<1x4x10xf32>
    %106 = vector.shape_cast %105 : vector<1x4x10xf32> to vector<4x10xf32>
    %cst_116 = arith.constant dense<0.000000e+00> : vector<4x160xf32>
    %107 = tpu.matmul %106, %89, %cst_116 {dimension_numbers = #tpu.dot_dimension_numbers<[1], [0], [0], [1], [0, 0, 1, 1], [], []>} : vector<4x10xf32>, vector<10x160xf32>, vector<4x160xf32> -> vector<4x160xf32>
    %c2_117 = arith.constant 2 : index
    %c0_118 = arith.constant 0 : index
    %c0_119 = arith.constant 0 : index
    %108 = vector.load %arg9[%c2_117, %c0_118, %c0_119] : memref<4x160x128xf32, #tpu.memory_space<vmem>>, vector<1x160x128xf32>
    %109 = vector.shape_cast %108 : vector<1x160x128xf32> to vector<160x128xf32>
    %cst_120 = arith.constant dense<0.000000e+00> : vector<4x128xf32>
    %110 = tpu.matmul %107, %109, %cst_120 {dimension_numbers = #tpu.dot_dimension_numbers<[1], [0], [0], [1], [0, 0, 1, 1], [], []>} : vector<4x160xf32>, vector<160x128xf32>, vector<4x128xf32> -> vector<4x128xf32>
    %111 = arith.addf %104, %110 : vector<4x128xf32>
    %c3_121 = arith.constant 3 : index
    %c0_122 = arith.constant 0 : index
    %c0_123 = arith.constant 0 : index
    %112 = vector.load %arg8[%c3_121, %c0_122, %c0_123] : memref<4x4x10xf32, #tpu.memory_space<vmem>>, vector<1x4x10xf32>
    %113 = vector.shape_cast %112 : vector<1x4x10xf32> to vector<4x10xf32>
    %cst_124 = arith.constant dense<0.000000e+00> : vector<4x160xf32>
    %114 = tpu.matmul %113, %89, %cst_124 {dimension_numbers = #tpu.dot_dimension_numbers<[1], [0], [0], [1], [0, 0, 1, 1], [], []>} : vector<4x10xf32>, vector<10x160xf32>, vector<4x160xf32> -> vector<4x160xf32>
    %c3_125 = arith.constant 3 : index
    %c0_126 = arith.constant 0 : index
    %c0_127 = arith.constant 0 : index
    %115 = vector.load %arg9[%c3_125, %c0_126, %c0_127] : memref<4x160x128xf32, #tpu.memory_space<vmem>>, vector<1x160x128xf32>
    %116 = vector.shape_cast %115 : vector<1x160x128xf32> to vector<160x128xf32>
    %cst_128 = arith.constant dense<0.000000e+00> : vector<4x128xf32>
    %117 = tpu.matmul %114, %116, %cst_128 {dimension_numbers = #tpu.dot_dimension_numbers<[1], [0], [0], [1], [0, 0, 1, 1], [], []>} : vector<4x160xf32>, vector<160x128xf32>, vector<4x128xf32> -> vector<4x128xf32>
    %118 = arith.addf %111, %117 : vector<4x128xf32>
    %c0_129 = arith.constant 0 : index
    %c0_130 = arith.constant 0 : index
    %119 = vector.load %arg10[%c0_129, %c0_130] : memref<1x128xf32, #tpu.memory_space<vmem>>, vector<1x128xf32>
    %120 = vector.broadcast %119 : vector<1x128xf32> to vector<4x128xf32>
    %121 = arith.addf %118, %120 : vector<4x128xf32>
    %cst_131 = arith.constant 0.000000e+00 : f32
    %122 = vector.broadcast %cst_131 : f32 to vector<4x128xf32>
    %123 = arith.cmpf oge, %121, %122 : vector<4x128xf32>
    %cst_132 = arith.constant 2.000000e-01 : f32
    %124 = vector.broadcast %cst_132 : f32 to vector<4x128xf32>
    %125 = arith.mulf %124, %121 : vector<4x128xf32>
    %126 = arith.select %123, %121, %125 : vector<4x128xi1>, vector<4x128xf32>
    %c0_133 = arith.constant 0 : index
    %c0_134 = arith.constant 0 : index
    %127 = vector.load %arg20[%c0_133, %c0_134] : memref<6x192xf32, #tpu.memory_space<vmem>>, vector<4x128xf32>
    tpu.vector_store %arg20[%c0_133, %c0_134], %126 {strides = array<i32>} : memref<6x192xf32, #tpu.memory_space<vmem>>, vector<4x128xf32>,
    %c0_135 = arith.constant 0 : index
    %c0_136 = arith.constant 0 : index
    %128 = vector.load %arg20[%c0_135, %c0_136] : memref<6x192xf32, #tpu.memory_space<vmem>>, vector<6x192xf32>
    %cst_137 = arith.constant 0.000000e+00 : f32
    %129 = vector.broadcast %cst_137 : f32 to vector<2x128xf32>
    %c0_138 = arith.constant 0 : index
    %c0_139 = arith.constant 0 : index
    %c0_140 = arith.constant 0 : index
    %130 = vector.load %arg11[%c0_138, %c0_139, %c0_140] : memref<4x2x6xf32, #tpu.memory_space<vmem>>, vector<1x2x6xf32>
    %131 = vector.shape_cast %130 : vector<1x2x6xf32> to vector<2x6xf32>
    %cst_141 = arith.constant dense<0.000000e+00> : vector<2x192xf32>
    %132 = tpu.matmul %131, %128, %cst_141 {dimension_numbers = #tpu.dot_dimension_numbers<[1], [0], [0], [1], [0, 0, 1, 1], [], []>} : vector<2x6xf32>, vector<6x192xf32>, vector<2x192xf32> -> vector<2x192xf32>
    %c0_142 = arith.constant 0 : index
    %c0_143 = arith.constant 0 : index
    %c0_144 = arith.constant 0 : index
    %133 = vector.load %arg12[%c0_142, %c0_143, %c0_144] : memref<4x192x128xf32, #tpu.memory_space<vmem>>, vector<1x192x128xf32>
    %134 = vector.shape_cast %133 : vector<1x192x128xf32> to vector<192x128xf32>
    %cst_145 = arith.constant dense<0.000000e+00> : vector<2x128xf32>
    %135 = tpu.matmul %132, %134, %cst_145 {dimension_numbers = #tpu.dot_dimension_numbers<[1], [0], [0], [1], [0, 0, 1, 1], [], []>} : vector<2x192xf32>, vector<192x128xf32>, vector<2x128xf32> -> vector<2x128xf32>
    %136 = arith.addf %129, %135 : vector<2x128xf32>
    %c1_146 = arith.constant 1 : index
    %c0_147 = arith.constant 0 : index
    %c0_148 = arith.constant 0 : index
    %137 = vector.load %arg11[%c1_146, %c0_147, %c0_148] : memref<4x2x6xf32, #tpu.memory_space<vmem>>, vector<1x2x6xf32>
    %138 = vector.shape_cast %137 : vector<1x2x6xf32> to vector<2x6xf32>
    %cst_149 = arith.constant dense<0.000000e+00> : vector<2x192xf32>
    %139 = tpu.matmul %138, %128, %cst_149 {dimension_numbers = #tpu.dot_dimension_numbers<[1], [0], [0], [1], [0, 0, 1, 1], [], []>} : vector<2x6xf32>, vector<6x192xf32>, vector<2x192xf32> -> vector<2x192xf32>
    %c1_150 = arith.constant 1 : index
    %c0_151 = arith.constant 0 : index
    %c0_152 = arith.constant 0 : index
    %140 = vector.load %arg12[%c1_150, %c0_151, %c0_152] : memref<4x192x128xf32, #tpu.memory_space<vmem>>, vector<1x192x128xf32>
    %141 = vector.shape_cast %140 : vector<1x192x128xf32> to vector<192x128xf32>
    %cst_153 = arith.constant dense<0.000000e+00> : vector<2x128xf32>
    %142 = tpu.matmul %139, %141, %cst_153 {dimension_numbers = #tpu.dot_dimension_numbers<[1], [0], [0], [1], [0, 0, 1, 1], [], []>} : vector<2x192xf32>, vector<192x128xf32>, vector<2x128xf32> -> vector<2x128xf32>
    %143 = arith.addf %136, %142 : vector<2x128xf32>
    %c2_154 = arith.constant 2 : index
    %c0_155 = arith.constant 0 : index
    %c0_156 = arith.constant 0 : index
    %144 = vector.load %arg11[%c2_154, %c0_155, %c0_156] : memref<4x2x6xf32, #tpu.memory_space<vmem>>, vector<1x2x6xf32>
    %145 = vector.shape_cast %144 : vector<1x2x6xf32> to vector<2x6xf32>
    %cst_157 = arith.constant dense<0.000000e+00> : vector<2x192xf32>
    %146 = tpu.matmul %145, %128, %cst_157 {dimension_numbers = #tpu.dot_dimension_numbers<[1], [0], [0], [1], [0, 0, 1, 1], [], []>} : vector<2x6xf32>, vector<6x192xf32>, vector<2x192xf32> -> vector<2x192xf32>
    %c2_158 = arith.constant 2 : index
    %c0_159 = arith.constant 0 : index
    %c0_160 = arith.constant 0 : index
    %147 = vector.load %arg12[%c2_158, %c0_159, %c0_160] : memref<4x192x128xf32, #tpu.memory_space<vmem>>, vector<1x192x128xf32>
    %148 = vector.shape_cast %147 : vector<1x192x128xf32> to vector<192x128xf32>
    %cst_161 = arith.constant dense<0.000000e+00> : vector<2x128xf32>
    %149 = tpu.matmul %146, %148, %cst_161 {dimension_numbers = #tpu.dot_dimension_numbers<[1], [0], [0], [1], [0, 0, 1, 1], [], []>} : vector<2x192xf32>, vector<192x128xf32>, vector<2x128xf32> -> vector<2x128xf32>
    %150 = arith.addf %143, %149 : vector<2x128xf32>
    %c3_162 = arith.constant 3 : index
    %c0_163 = arith.constant 0 : index
    %c0_164 = arith.constant 0 : index
    %151 = vector.load %arg11[%c3_162, %c0_163, %c0_164] : memref<4x2x6xf32, #tpu.memory_space<vmem>>, vector<1x2x6xf32>
    %152 = vector.shape_cast %151 : vector<1x2x6xf32> to vector<2x6xf32>
    %cst_165 = arith.constant dense<0.000000e+00> : vector<2x192xf32>
    %153 = tpu.matmul %152, %128, %cst_165 {dimension_numbers = #tpu.dot_dimension_numbers<[1], [0], [0], [1], [0, 0, 1, 1], [], []>} : vector<2x6xf32>, vector<6x192xf32>, vector<2x192xf32> -> vector<2x192xf32>
    %c3_166 = arith.constant 3 : index
    %c0_167 = arith.constant 0 : index
    %c0_168 = arith.constant 0 : index
    %154 = vector.load %arg12[%c3_166, %c0_167, %c0_168] : memref<4x192x128xf32, #tpu.memory_space<vmem>>, vector<1x192x128xf32>
    %155 = vector.shape_cast %154 : vector<1x192x128xf32> to vector<192x128xf32>
    %cst_169 = arith.constant dense<0.000000e+00> : vector<2x128xf32>
    %156 = tpu.matmul %153, %155, %cst_169 {dimension_numbers = #tpu.dot_dimension_numbers<[1], [0], [0], [1], [0, 0, 1, 1], [], []>} : vector<2x192xf32>, vector<192x128xf32>, vector<2x128xf32> -> vector<2x128xf32>
    %157 = arith.addf %150, %156 : vector<2x128xf32>
    %c0_170 = arith.constant 0 : index
    %c0_171 = arith.constant 0 : index
    %158 = vector.load %arg13[%c0_170, %c0_171] : memref<1x128xf32, #tpu.memory_space<vmem>>, vector<1x128xf32>
    %159 = vector.broadcast %158 : vector<1x128xf32> to vector<2x128xf32>
    %160 = arith.addf %157, %159 : vector<2x128xf32>
    %cst_172 = arith.constant 0.000000e+00 : f32
    %161 = vector.broadcast %cst_172 : f32 to vector<2x128xf32>
    %162 = arith.cmpf oge, %160, %161 : vector<2x128xf32>
    %cst_173 = arith.constant 2.000000e-01 : f32
    %163 = vector.broadcast %cst_173 : f32 to vector<2x128xf32>
    %164 = arith.mulf %163, %160 : vector<2x128xf32>
    %165 = arith.select %162, %160, %164 : vector<2x128xi1>, vector<2x128xf32>
    %166 = vector.extract_strided_slice %165 {offsets = [0, 0], sizes = [1, 128], strides = [1, 1]} : vector<2x128xf32> to vector<1x128xf32>
    %c0_174 = arith.constant 0 : index
    %c0_175 = arith.constant 0 : index
    %c0_176 = arith.constant 0 : index
    %167 = vector.load %arg14[%c0_174, %c0_175, %c0_176] : memref<2x128x32xf32, #tpu.memory_space<vmem>>, vector<1x128x32xf32>
    %168 = vector.shape_cast %167 : vector<1x128x32xf32> to vector<128x32xf32>
    %cst_177 = arith.constant dense<0.000000e+00> : vector<1x32xf32>
    %169 = tpu.matmul %166, %168, %cst_177 {dimension_numbers = #tpu.dot_dimension_numbers<[1], [0], [0], [1], [0, 0, 1, 1], [], []>} : vector<1x128xf32>, vector<128x32xf32>, vector<1x32xf32> -> vector<1x32xf32>
    %170 = vector.extract_strided_slice %165 {offsets = [1, 0], sizes = [1, 128], strides = [1, 1]} : vector<2x128xf32> to vector<1x128xf32>
    %c1_178 = arith.constant 1 : index
    %c0_179 = arith.constant 0 : index
    %c0_180 = arith.constant 0 : index
    %171 = vector.load %arg14[%c1_178, %c0_179, %c0_180] : memref<2x128x32xf32, #tpu.memory_space<vmem>>, vector<1x128x32xf32>
    %172 = vector.shape_cast %171 : vector<1x128x32xf32> to vector<128x32xf32>
    %cst_181 = arith.constant dense<0.000000e+00> : vector<1x32xf32>
    %173 = tpu.matmul %170, %172, %cst_181 {dimension_numbers = #tpu.dot_dimension_numbers<[1], [0], [0], [1], [0, 0, 1, 1], [], []>} : vector<1x128xf32>, vector<128x32xf32>, vector<1x32xf32> -> vector<1x32xf32>
    %174 = arith.addf %169, %173 : vector<1x32xf32>
    %c0_182 = arith.constant 0 : index
    %c0_183 = arith.constant 0 : index
    %175 = vector.load %arg15[%c0_182, %c0_183] : memref<1x32xf32, #tpu.memory_space<vmem>>, vector<1x32xf32>
    %176 = arith.addf %174, %175 : vector<1x32xf32>
    %c0_184 = arith.constant 0 : index
    %c0_185 = arith.constant 0 : index
    %c0_186 = arith.constant 0 : index
    %177 = vector.load %arg16[%c0_184, %c0_185, %c0_186] : memref<1x1x32xf32, #tpu.memory_space<vmem>>, vector<1x1x32xf32>
    %178 = vector.shape_cast %177 : vector<1x1x32xf32> to vector<1x32xf32>
    %179 = vector.shape_cast %176 : vector<1x32xf32> to vector<1x1x32xf32>
    tpu.vector_store %arg16[%c0_184, %c0_185, %c0_186], %179 {strides = array<i32>} : memref<1x1x32xf32, #tpu.memory_space<vmem>>, vector<1x1x32xf32>,
    return
  }
  func.func @transform_0(%arg0: i32) -> (i32, i32, i32) {
    %c0_i32 = arith.constant 0 : i32
    %c0_i32_0 = arith.constant 0 : i32
    %c0_i32_1 = arith.constant 0 : i32
    return %arg0, %c0_i32, %c0_i32_0 : i32, i32, i32
  }
  func.func @transform_1(%arg0: i32) -> (i32, i32, i32) {
    %c0_i32 = arith.constant 0 : i32
    %c0_i32_0 = arith.constant 0 : i32
    %c0_i32_1 = arith.constant 0 : i32
    %c0_i32_2 = arith.constant 0 : i32
    return %c0_i32, %c0_i32_0, %c0_i32_1 : i32, i32, i32
  }
  func.func @transform_2(%arg0: i32) -> (i32, i32, i32) {
    %c0_i32 = arith.constant 0 : i32
    %c0_i32_0 = arith.constant 0 : i32
    %c0_i32_1 = arith.constant 0 : i32
    %c0_i32_2 = arith.constant 0 : i32
    return %c0_i32, %c0_i32_0, %c0_i32_1 : i32, i32, i32
  }
  func.func @transform_3(%arg0: i32) -> (i32, i32) {
    %c0_i32 = arith.constant 0 : i32
    %c0_i32_0 = arith.constant 0 : i32
    %c0_i32_1 = arith.constant 0 : i32
    return %c0_i32, %c0_i32_0 : i32, i32
  }
  func.func @transform_4(%arg0: i32) -> (i32, i32, i32) {
    %c0_i32 = arith.constant 0 : i32
    %c0_i32_0 = arith.constant 0 : i32
    %c0_i32_1 = arith.constant 0 : i32
    %c0_i32_2 = arith.constant 0 : i32
    return %c0_i32, %c0_i32_0, %c0_i32_1 : i32, i32, i32
  }
  func.func @transform_5(%arg0: i32) -> (i32, i32, i32) {
    %c0_i32 = arith.constant 0 : i32
    %c0_i32_0 = arith.constant 0 : i32
    %c0_i32_1 = arith.constant 0 : i32
    %c0_i32_2 = arith.constant 0 : i32
    return %c0_i32, %c0_i32_0, %c0_i32_1 : i32, i32, i32
  }
  func.func @transform_6(%arg0: i32) -> (i32, i32) {
    %c0_i32 = arith.constant 0 : i32
    %c0_i32_0 = arith.constant 0 : i32
    %c0_i32_1 = arith.constant 0 : i32
    return %c0_i32, %c0_i32_0 : i32, i32
  }
  func.func @transform_7(%arg0: i32) -> (i32, i32, i32) {
    %c0_i32 = arith.constant 0 : i32
    %c0_i32_0 = arith.constant 0 : i32
    %c0_i32_1 = arith.constant 0 : i32
    %c0_i32_2 = arith.constant 0 : i32
    return %c0_i32, %c0_i32_0, %c0_i32_1 : i32, i32, i32
  }
  func.func @transform_8(%arg0: i32) -> (i32, i32, i32) {
    %c0_i32 = arith.constant 0 : i32
    %c0_i32_0 = arith.constant 0 : i32
    %c0_i32_1 = arith.constant 0 : i32
    %c0_i32_2 = arith.constant 0 : i32
    return %c0_i32, %c0_i32_0, %c0_i32_1 : i32, i32, i32
  }
  func.func @transform_9(%arg0: i32) -> (i32, i32) {
    %c0_i32 = arith.constant 0 : i32
    %c0_i32_0 = arith.constant 0 : i32
    %c0_i32_1 = arith.constant 0 : i32
    return %c0_i32, %c0_i32_0 : i32, i32
  }
  func.func @transform_10(%arg0: i32) -> (i32, i32, i32) {
    %c0_i32 = arith.constant 0 : i32
    %c0_i32_0 = arith.constant 0 : i32
    %c0_i32_1 = arith.constant 0 : i32
    %c0_i32_2 = arith.constant 0 : i32
    return %c0_i32, %c0_i32_0, %c0_i32_1 : i32, i32, i32
  }
  func.func @transform_11(%arg0: i32) -> (i32, i32, i32) {
    %c0_i32 = arith.constant 0 : i32
    %c0_i32_0 = arith.constant 0 : i32
    %c0_i32_1 = arith.constant 0 : i32
    %c0_i32_2 = arith.constant 0 : i32
    return %c0_i32, %c0_i32_0, %c0_i32_1 : i32, i32, i32
  }
  func.func @transform_12(%arg0: i32) -> (i32, i32) {
    %c0_i32 = arith.constant 0 : i32
    %c0_i32_0 = arith.constant 0 : i32
    %c0_i32_1 = arith.constant 0 : i32
    return %c0_i32, %c0_i32_0 : i32, i32
  }
  func.func @transform_13(%arg0: i32) -> (i32, i32, i32) {
    %c0_i32 = arith.constant 0 : i32
    %c0_i32_0 = arith.constant 0 : i32
    %c0_i32_1 = arith.constant 0 : i32
    %c0_i32_2 = arith.constant 0 : i32
    return %c0_i32, %c0_i32_0, %c0_i32_1 : i32, i32, i32
  }
  func.func @transform_14(%arg0: i32) -> (i32, i32) {
    %c0_i32 = arith.constant 0 : i32
    %c0_i32_0 = arith.constant 0 : i32
    %c0_i32_1 = arith.constant 0 : i32
    return %c0_i32, %c0_i32_0 : i32, i32
  }
  func.func @transform_15(%arg0: i32) -> (i32, i32, i32) {
    %c0_i32 = arith.constant 0 : i32
    %c0_i32_0 = arith.constant 0 : i32
    %c0_i32_1 = arith.constant 0 : i32
    return %arg0, %c0_i32, %c0_i32_0 : i32, i32, i32
  }
}

</mosaic_0001>

<bundles_post_ra>
// kernel: encoder_forward.1
= control target key start
LH: loop header
LB: loop body
LE: loop exit
PB: predicated region body
PF: predicated region fallthrough
CT: control target
= control target key end

     0   :  { %s3861_s0 = inlined_call_operand.vmem [shape: f32[2,32,96], index: 0, kind: input, shape index: {}]   ;;  %s3862_s1 = inlined_call_operand.vmem [shape: f32[4,16,34], index: 1, kind: input, shape index: {}]   ;;  %s3863_s2 = inlined_call_operand.vmem [shape: f32[4,102,128], index: 2, kind: input, shape index: {}]   ;;  %s3864_s3 = inlined_call_operand.vmem [shape: f32[1,128], index: 3, kind: input, shape index: {}]   ;;  %s3865_s4 = inlined_call_operand.vmem [shape: f32[4,8,18], index: 4, kind: input, shape index: {}]   ;;  %s3866_s5 = inlined_call_operand.hbm [shape: f32[4,144,128], index: 5, kind: input, shape index: {}]   ;;  %s3867_s6 = inlined_call_operand.vmem [shape: f32[1,128], index: 6, kind: input, shape index: {}]   ;;  %s3868_s7 = inlined_call_operand.vmem [shape: f32[4,4,10], index: 7, kind: input, shape index: {}]   ;;  %s3869_s8 = inlined_call_operand.hbm [shape: f32[4,160,128], index: 8, kind: input, shape index: {}]   ;;  %s3870_s9 = inlined_call_operand.vmem [shape: f32[1,128], index: 9, kind: input, shape index: {}]   ;;  %s3871_s10 = inlined_call_operand.vmem [shape: f32[4,2,6], index: 10, kind: input, shape index: {}]   ;;  %s3872_s11 = inlined_call_operand.vmem [shape: f32[4,192,128], index: 11, kind: input, shape index: {}]   ;;  %s3873_s12 = inlined_call_operand.vmem [shape: f32[1,128], index: 12, kind: input, shape index: {}]   ;;  %s3874_s13 = inlined_call_operand.vmem [shape: f32[2,128,32], index: 13, kind: input, shape index: {}]   ;;  %s3875_s14 = inlined_call_operand.vmem [shape: f32[1,32], index: 14, kind: input, shape index: {}]   ;;  %s3876_s15 = inlined_call_operand.hbm [shape: f32[2,1,32], index: 15, kind: output, shape index: {}]  }
   0x1   :  { %3883 = sst [smem:[#allocation21_spill]] %s3861_s0 }
   0x2   :  { %20 = vsyncpa [#allocation7], 0 }
   0x3   :  { %21 = vsyncpa [#allocation10], 0 }
   0x4   :  { %22 = vsyncpa [#allocation8], 0 }
   0x5   :  { %24 = vsyncpa [#allocation8 + $0x1], 0  ;;  %s2967_s18 = smov 0   ;;  %s2969_s19 = smov 0  }
   0x6   :  { %s2971_s20 = smov 0   ;;  %s2973_s21 = smov 0  }
   0x7 LB: > { %3884 = sst [smem:[#allocation15_spill]] %s2868_s18  ;;  %s2988_s22 = sadd.s32 4294967295, %s2880_s21   ;;  %s2880_s21 = sphi %s2973_s21, %s3897_s21   ;;  %s2876_s20 = sphi %s2971_s20, %s3899_s20   ;;  %s2872_s19 = sphi %s2969_s19, %s3901_s19   ;;  %s2868_s18 = sphi %s2967_s18, %s3900_s18  }
   0x8   : > { %3885 = sst [smem:[#allocation16_spill]] %s2876_s20  ;;  %s2444_s23 = sadd.s32 4294967294, %s2880_s21  }
   0x9   : > { %3886 = sst [smem:[#allocation17_spill]] %s2880_s21  ;;  %s2992_s24 = sadd.s32 1, %s2880_s21  }
   0xa   : > { %3887 = sst [smem:[#allocation18_spill]] %s2992_s24  ;;  %s357_s25 = sadd.s32 1, %s2876_s20 }
   0xb   : > { %s354_s26 = ssub.s32 %s2880_s21, %s2992_s24  ;;  %p367_p0 = scmp.ne.s32.totalorder %s2876_s20, %s2872_s19 }
   0xc   : > { %p355_p1 = scmp.eq.s32.totalorder %s354_s26, 0  ;;  %p368_p2 = scmp.eq.s32.totalorder %s2988_s22, 1 }
   0xd   : > { %p373_p3 = scmp.ne.s32.totalorder %s2872_s19, %s2868_s18  ;;  %p374_p4 = scmp.eq.s32.totalorder %s2444_s23, 1 }
   0xe   : > { %s3003_s27 = scalar_select %p355_p1, %s2876_s20, %s357_s25  }
   0xf   : > { %p3005_p5 = por %p368_p2, %p367_p0  ;;  %p3009_p6 = por %p374_p4, %p373_p3 }
  0x10   : > { %3888 = sst [smem:[#allocation19_spill]] %s3003_s27  ;;  %p2445_p7 = scmp.ge.s32.totalorder %s2880_s21, 1 }
  0x11   : > { %s3890_s29 = scalar_select %p3009_p6, 1, 0 }
  0x12   : > { %p381_p8 = scmp.lt.s32.totalorder %s2880_s21, 3  ;;  %p2704_p9 = scmp.eq.s32.totalorder %s2988_s22, 0 }
  0x13   : > { %3891 = sst [smem:[#allocation20_spill]] %s3890_s29  ;;  %s404_s23 = sshll.u32 %s3866_s5, 4  ;;  %s405_s23 = int_to_ptr.hbm [resolvable:$true] %s404_s23 }
  0x14   : > { %p3016_p10 = pnand %p2445_p7, %p381_p8  ;;  %s2882_s25 = smov [#allocation6]  }
  0x15   : > { %s406_s26 = sshll.u32 %s2882_s25, 4  ;;  %s424_s24 = sshll.u32 %s3869_s8, 4  ;;  %s407_s26 = int_to_ptr.vmem [resolvable:$true] %s406_s26  ;;  %s425_s24 = int_to_ptr.hbm [resolvable:$true] %s424_s24 }
  0x16   : > { %p2693_p11 = pneg %p3016_p10  ;;  %s2883_s29 = smov 128  }
  0x17   : > { %s2884_s18 = smov 8   ;;  %s2885_s21 = smov [#allocation9]  }
  0x18   : > { %p2694_p12 = pnand %p2704_p9, %p2693_p11  ;;  %s426_s16 = sshll.u32 %s2885_s21, 4  ;;  %s427_s16 = int_to_ptr.vmem [resolvable:$true] %s426_s16 }
  0x19   : > { %468 = sbr.rel (%p3016_p10) target bundleno = 1919 (0x77f), region = 80 }
  0x1a   : > { %2696 = dma.hbm_to_vmem [thread:$0]  (!%p2694_p12), %s405_s23, 9216, %s407_s26, [#allocation7], %s2883_s29, %s2883_s29, %s2884_s18  }
  0x1b   : > { %2699 = dma.hbm_to_vmem [thread:$0]  (!%p2694_p12), %s425_s24, 10240, %s427_s16, [#allocation10], %s2883_s29, %s2883_s29, %s2884_s18  }
  0x1e   : > { %2855 = dma.done.wait (%p2704_p9), [#allocation7], 9216  }
  0x1f   : > { %2857 = vsyncadd (%p2704_p9), [#allocation7], 4294958080 }
  0x20   : > { %2859 = dma.done.wait (%p2704_p9), [#allocation10], 10240  }
  0x21   : > { %2861 = vsyncadd (%p2704_p9), [#allocation10], 4294957056  ;;  %vm531_vm0 = vcmask 828416   ;;  %p521_p13 = scmp.lt.s32.totalorder %s2988_s22, 1  ;;  %v2886_v0 = vmov 0.0   ;;  %vm526_vm1 = vcmask 834560   ;;  %s2363_s23 = scalar_lea.hbm %s3876_s15, %s2988_s22 }
  0x22   : > { %532 = vst.msk [vmem:[#allocation2 + $0x20] sm:$0x3] %vm531_vm0, %v2886_v0  ;;  %s3893_s0 = sld [smem:[#allocation21_spill]]  ;;  %vm554_vm2 = vcmask 785408   ;;  %vm573_vm3 = vcmask 1041408   ;;  %v564_v10 = vld [vmem:[%s3862_s1] sm:$0xff] }
  0x23   : > { %538 = vst [vmem:[#allocation3 + $0x20] sm:$0x3] %v2886_v0  ;;  %s522_s18 = scalar_select %p521_p13, %s2988_s22, 1  ;;  %vm566_vm4 = vcmask 277504   ;;  %v2457_v11 = vld [vmem:[%s3862_s1 + $0x10] sm:$0xff]  ;;  %v565_v12 = vld [vmem:[%s3862_s1 + $0x8] sm:$0xff] }
  0x24   : > { %544 = vst [vmem:[#allocation4 + $0x10] sm:$0x3] %v2886_v0  ;;  %v2458_v13 = vld [vmem:[%s3862_s1 + $0x18] sm:$0xff]  ;;  %v2474_v14 = vld [vmem:[%s3863_s2 + $0xc8] sm:$0x3f]  ;;  %vm665_vm5 = vcmask 1045504  }
  0x25   : > { %547 = vst [vmem:[#allocation5] sm:$0x3f] %v2886_v0  ;;  %s2682_s20 = sshll.u32 %s522_s18, 5  ;;  %v612_v15 = vld [vmem:[%s3863_s2 + $0x60] sm:$0x3f]  ;;  %2475 = vmatpush.msk.msra.mxu2 %vm665_vm5, %v2474_v14  ;;  %v611_v17 = vld [vmem:[%s3863_s2 + $0x58] sm:$0xff] }
  0x26   : > { %530 = vst.msk [vmem:[#allocation2 + $0x18] sm:$0xff] %vm526_vm1, %v2886_v0  ;;  %v2473_v16 = vld [vmem:[%s3863_s2 + $0xc0] sm:$0xff]  ;;  %2478 = vmatpush.msk.msra.mxu3 %vm665_vm5, %v612_v15  ;;  %v2472_v18 = vld [vmem:[%s3863_s2 + $0xb8] sm:$0xff]  ;;  %v610_v19 = vld [vmem:[%s3863_s2 + $0x50] sm:$0xff]  ;;  %vm539_vm6 = vcmask 123904   ;;  %vm534_vm7 = vcmask 130048  }
  0x27   : > { %527 = vst.msk [vmem:[#allocation2] sm:$0xff] %vm526_vm1, %v2886_v0  ;;  %673 = vmatpush.msra.mxu2 %v2473_v16  ;;  %v2471_v20 = vld [vmem:[%s3863_s2 + $0xb0] sm:$0xff]  ;;  %v2481_v21 = vld [vmem:[%s3862_s1 + $0x20] sm:$0xff]  ;;  %v609_v22 = vld [vmem:[%s3863_s2 + $0x48] sm:$0xff]  ;;  %vm905_vm8 = vcmask 146432   ;;  %vm545_vm11 = vcmask 254976  }
  0x28   : > { %s525_s27 = scalar_lea.vmem %s3893_s0, %s2682_s20  ;;  %528 = vst.msk [vmem:[#allocation2 + $0x8] sm:$0xff] %vm526_vm1, %v2886_v0  ;;  %705 = vmatpush.msra.mxu3 %v611_v17  ;;  %v2470_v23 = vld [vmem:[%s3863_s2 + $0xa8] sm:$0xff]  ;;  %v2498_v24 = vld [vmem:[%s3863_s2 + $0x130] sm:$0x3f]  ;;  %v608_v25 = vld [vmem:[%s3863_s2 + $0x40] sm:$0xff]  ;;  %vm542_vm12 = vcmask 261120  }
  0x29   : > { %v553_v1 = vld [vmem:[%s525_s27 + $0x18] sm:$0xff]  ;;  %v552_v2 = vld [vmem:[%s525_s27 + $0x10] sm:$0xff]  ;;  %v563_v3 = vld [vmem:[#allocation2 + $0x20] sm:$0x3]  ;;  %529 = vst.msk [vmem:[#allocation2 + $0x10] sm:$0xff] %vm526_vm1, %v2886_v0  ;;  %674 = vmatpush.msra.mxu2 %v2472_v18  ;;  %vm1353_vm13 = vcmask 80896  }
  0x2a   : > { %558 = vst.msk [vmem:[#allocation2 + $0x18] sm:$0xff] %vm554_vm2, %v553_v1  ;;  %v551_v4 = vld [vmem:[%s525_s27 + $0x8] sm:$0xff]  ;;  %2454 = vmatpush.msk.msra.mxu0 %vm573_vm3, %v563_v3  ;;  %2459 = vmatpush.msk.msra.mxu1 %vm573_vm3, %v563_v3  ;;  %v550_v5 = vld [vmem:[%s525_s27] sm:$0xff]  ;;  %v607_v28 = vld [vmem:[%s3863_s2 + $0x38] sm:$0xff]  ;;  %vm548_vm15 = vcmask 521216   ;;  %vm1807_vm0 = vcmask 48128  }
  0x2b   : > { %557 = vst.msk [vmem:[#allocation2 + $0x10] sm:$0xff] %vm554_vm2, %v552_v2  ;;  %706 = vmatpush.msra.mxu3 %v610_v19  ;;  %675 = vmatpush.msra.mxu2 %v2471_v20  ;;  %v2497_v26 = vld [vmem:[%s3863_s2 + $0x128] sm:$0xff]  ;;  %v2469_v27 = vld [vmem:[%s3863_s2 + $0xa0] sm:$0xff]  ;;  %v2468_v30 = vld [vmem:[%s3863_s2 + $0x98] sm:$0xff]  ;;  %s519_s29 = sand.u32 1, %s2872_s19   ;;  %s2367_s20 = sshll.u32 %s2363_s23, 4  ;;  %s2368_s20 = int_to_ptr.hbm [resolvable:$true] %s2367_s20 }
  0x2c   : > { %556 = vst.msk [vmem:[#allocation2 + $0x8] sm:$0xff] %vm554_vm2, %v551_v4  ;;  %v2496_v29 = vld [vmem:[%s3863_s2 + $0x120] sm:$0xff]  ;;  %v606_v31 = vld [vmem:[%s3863_s2 + $0x30] sm:$0xff]  ;;  %v2495_v32 = vld [vmem:[%s3863_s2 + $0x118] sm:$0xff]  ;;  %s520_s16 = scalar_lea.vmem [#allocation11], %s519_s29  ;;  %s2355_s21 = scalar_lea.sflag [#allocation8], %s519_s29 }
  0x2d   : > { %555 = vst.msk [vmem:[#allocation2] sm:$0xff] %vm554_vm2, %v550_v5  ;;  %707 = vmatpush.msra.mxu3 %v609_v22  ;;  %676 = vmatpush.msra.mxu2 %v2470_v23  ;;  %v2467_v33 = vld [vmem:[%s3863_s2 + $0x90] sm:$0xff]  ;;  %v2482_v34 = vld [vmem:[%s3862_s1 + $0x28] sm:$0xff]  ;;  %v604_v37 = vld [vmem:[%s3863_s2 + $0x20] sm:$0xff]  ;;  %vm1951_vm2 = vcmask 523264   ;;  %s2365_s18 = sshll.u32 %s520_s16, 4  ;;  %s2366_s18 = int_to_ptr.vmem [resolvable:$true] %s2365_s18 }
  0x2e   : > { %v605_v35 = vld [vmem:[%s3863_s2 + $0x28] sm:$0xff]  ;;  %v2465_v38 = vld [vmem:[%s3863_s2 + $0x80] sm:$0xff]  ;;  %v603_v39 = vld [vmem:[%s3863_s2 + $0x18] sm:$0xff]  ;;  %540 = vst.msk [vmem:[#allocation3 + $0x28] sm:$0x3] %vm539_vm6, %v2886_v0  ;;  %s2824_s24 = sshra.s32 %s2368_s20, 4  ;;  %s2825_s24 = int_to_ptr.hbm [resolvable:$true] %s2824_s24 }
  0x2f   : > { %708 = vmatpush.msra.mxu3 %v608_v25  ;;  %677 = vmatpush.msra.mxu2 %v2469_v27  ;;  %v2466_v36 = vld [vmem:[%s3863_s2 + $0x88] sm:$0xff]  ;;  %v2464_v40 = vld [vmem:[%s3863_s2 + $0x78] sm:$0xff]  ;;  %v602_v41 = vld [vmem:[%s3863_s2 + $0x10] sm:$0xff]  ;;  %537 = vst.msk [vmem:[#allocation3 + $0x18] sm:$0xff] %vm534_vm7, %v2886_v0  ;;  %s2826_s22 = scalar_lea.hbm %s2825_s24, 1  ;;  %s2830_s17 = scalar_lea.hbm %s3876_s15, 2 }
  0x30   : > { %v2463_v42 = vld [vmem:[%s3863_s2 + $0x70] sm:$0xff]  ;;  %v601_v44 = vld [vmem:[%s3863_s2 + $0x8] sm:$0xff]  ;;  %v2503_v45 = vld [vmem:[%s3862_s1 + $0x38] sm:$0xff]  ;;  %535 = vst.msk [vmem:[#allocation3 + $0x8] sm:$0xff] %vm534_vm7, %v2886_v0  ;;  %p2827_p0 = scmp.ne.s32.totalorder %s2825_s24, %s2826_s22  ;;  %p2831_p3 = scmp.lt.s32.totalorder %s2825_s24, %s3876_s15 }
  0x31   : > { %v562_v6 = vld [vmem:[#allocation2 + $0x18] sm:$0xff]  ;;  %709 = vmatpush.msra.mxu3 %v607_v28  ;;  %678 = vmatpush.msra.mxu2 %v2468_v30  ;;  %v2502_v43 = vld [vmem:[%s3862_s1 + $0x30] sm:$0xff]  ;;  %v2462_v46 = vld [vmem:[%s3863_s2 + $0x68] sm:$0xff]  ;;  %546 = vst.msk [vmem:[#allocation4 + $0x18] sm:$0x3] %vm545_vm11, %v2886_v0  ;;  %p2832_p4 = scmp.lt.s32.totalorder %s2830_s17, %s2826_s22 }
  0x32   : > { %589 = vmatpush.msra.mxu0 %v562_v6  ;;  %634 = vmatpush.msra.mxu1 %v562_v6  ;;  %v561_v7 = vld [vmem:[#allocation2 + $0x10] sm:$0xff]  ;;  %v600_v47 = vld [vmem:[%s3863_s2] sm:$0xff]  ;;  %v2493_v49 = vld [vmem:[%s3863_s2 + $0x108] sm:$0xff]  ;;  %543 = vst.msk [vmem:[#allocation4 + $0x8] sm:$0xff] %vm542_vm12, %v2886_v0  ;;  %p2828_p1 = pnand %p2827_p0, %p3005_p5 }
  0x33   : > { %v560_v8 = vld [vmem:[#allocation2 + $0x8] sm:$0xff]  ;;  %710 = vmatpush.msra.mxu3 %v606_v31  ;;  %679 = vmatpush.msra.mxu2 %v2467_v33  ;;  %v2494_v48 = vld [vmem:[%s3863_s2 + $0x110] sm:$0xff]  ;;  %v2492_v50 = vld [vmem:[%s3863_s2 + $0x100] sm:$0xff]  ;;  %549 = vst.msk [vmem:[#allocation5 + $0x8] sm:$0x3f] %vm548_vm15, %v2886_v0  ;;  %p2833_p7 = por %p2832_p4, %p2831_p3 }
  0x34   : > { %590 = vmatpush.msra.mxu0 %v561_v7  ;;  %635 = vmatpush.msra.mxu1 %v561_v7  ;;  %v559_v9 = vld [vmem:[#allocation2] sm:$0xff]  ;;  %v2491_v51 = vld [vmem:[%s3863_s2 + $0xf8] sm:$0xff]  ;;  %v2490_v52 = vld [vmem:[%s3863_s2 + $0xf0] sm:$0xff]  ;;  %p2829_p2 = pneg %p2828_p1 }
  0x35   : > { %711 = vmatpush.msra.mxu3 %v605_v35  ;;  %680 = vmatpush.msra.mxu2 %v2466_v36  ;;  %v2519_v53 = vld [vmem:[%s3863_s2 + $0x198] sm:$0x3f]  ;;  %v2489_v54 = vld [vmem:[%s3863_s2 + $0xe8] sm:$0xff]  ;;  %v2518_v55 = vld [vmem:[%s3863_s2 + $0x190] sm:$0xff] }
  0x36   : > { %591 = vmatpush.msra.mxu0 %v560_v8  ;;  %636 = vmatpush.msra.mxu1 %v560_v8  ;;  %v2488_v56 = vld [vmem:[%s3863_s2 + $0xe0] sm:$0xff]  ;;  %v2517_v57 = vld [vmem:[%s3863_s2 + $0x188] sm:$0xff]  ;;  %v2487_v59 = vld [vmem:[%s3863_s2 + $0xd8] sm:$0xff]  ;;  %p2834_p8 = pnand %p2833_p7, %p2829_p2 }
  0x37   : > { %712 = vmatpush.msra.mxu3 %v604_v37  ;;  %681 = vmatpush.msra.mxu2 %v2465_v38  ;;  %v2516_v58 = vld [vmem:[%s3863_s2 + $0x180] sm:$0xff]  ;;  %v2486_v60 = vld [vmem:[%s3863_s2 + $0xd0] sm:$0xff]  ;;  %v2515_v61 = vld [vmem:[%s3863_s2 + $0x178] sm:$0xff] }
  0x38   : > { %592 = vmatpush.msra.mxu0 %v559_v9  ;;  %637 = vmatpush.msra.mxu1 %v559_v9  ;;  %v2514_v62 = vld [vmem:[%s3863_s2 + $0x170] sm:$0xff]  ;;  %v2513_v63 = vld [vmem:[%s3863_s2 + $0x168] sm:$0xff]  ;;  %v2512_v1 = vld [vmem:[%s3863_s2 + $0x160] sm:$0xff] }
  0x39   : > { %2455 = vmatmul.msk.f32.vlgmr.msra.gmra.mxu0 %vm566_vm4, %v564_v10  ;;  %2460 = vmatmul.msk.f32.vlgmr.msra.gmra.mxu1 %vm566_vm4, %v2457_v11  ;;  %v2511_v2 = vld [vmem:[%s3863_s2 + $0x158] sm:$0xff]  ;;  %v2509_v4 = vld [vmem:[%s3863_s2 + $0x148] sm:$0xff]  ;;  %v2508_v5 = vld [vmem:[%s3863_s2 + $0x140] sm:$0xff] }
  0x3a   : > { %2483 = vmatpush.msk.msrb.mxu0 %vm573_vm3, %v563_v3  ;;  %2499 = vmatpush.msk.msrb.mxu1 %vm665_vm5, %v2498_v24  ;;  %v3261_v15 = vld [vmem:[#allocation3 + $0x20] sm:$0x3]  ;;  %v3272_v17 = vld [vmem:[#allocation3 + $0x28] sm:$0x3]  ;;  %v3276_v18 = vld [vmem:[#allocation3 + $0x18] sm:$0xff] }
  0x3b   : > { %713 = vmatpush.msra.mxu3 %v603_v39  ;;  %682 = vmatpush.msra.mxu2 %v2464_v40  ;;  %v2527_v23 = vld [vmem:[%s3865_s4 + $0x8] sm:$0xff]  ;;  %v970_v24 = vld [vmem:[#allocation6 + $0x78] sm:$0xff]  ;;  %v968_v30 = vld [vmem:[#allocation6 + $0x68] sm:$0xff] }
  0x3c   : > { %745 = vmatpush.msrb.mxu0 %v562_v6  ;;  %783 = vmatpush.msrb.mxu1 %v2497_v26  ;;  %v969_v26 = vld [vmem:[#allocation6 + $0x70] sm:$0xff]  ;;  %v2746_v28 = vld [vmem:[%s3864_s3] ss:$0 sm:$0xff]  ;;  %v967_v33 = vld [vmem:[#allocation6 + $0x60] sm:$0xff] }
  0x3d   : > { %714 = vmatpush.msra.mxu3 %v602_v41  ;;  %683 = vmatpush.msra.mxu2 %v2463_v42  ;;  %v966_v36 = vld [vmem:[#allocation6 + $0x58] sm:$0xff]  ;;  %v965_v39 = vld [vmem:[#allocation6 + $0x50] sm:$0xff] }
  0x3e   : > { %746 = vmatpush.msrb.mxu0 %v561_v7  ;;  %784 = vmatpush.msrb.mxu1 %v2496_v29 }
  0x3f   : > { %715 = vmatpush.msra.mxu3 %v601_v44  ;;  %684 = vmatpush.msra.mxu2 %v2462_v46 }
  0x40   : > { %747 = vmatpush.msrb.mxu0 %v560_v8  ;;  %785 = vmatpush.msrb.mxu1 %v2495_v32 }
  0x41   : > { %2456 = vmatmul.msk.f32.gmra.mxu0 %vm566_vm4, %v565_v12  ;;  %2461 = vmatmul.msk.f32.gmra.mxu1 %vm566_vm4, %v2458_v13 }
  0x42   : > { %748 = vmatpush.msrb.mxu0 %v559_v9  ;;  %716 = vmatpush.msra.mxu3 %v600_v47  ;;  %v962_v47 = vld [vmem:[#allocation6 + $0x38] sm:$0xff] }
  0x43   : > { %786 = vmatpush.msrb.mxu1 %v2494_v48  ;;  %2520 = vmatpush.msk.msrb.mxu2 %vm665_vm5, %v2519_v53  ;;  %v960_v53 = vld [vmem:[#allocation6 + $0x28] sm:$0xff] }
  0x44   : > { %2504 = vmatpush.msk.msra.mxu0 %vm573_vm3, %v563_v3  ;;  %v2510_v3 = vld [vmem:[%s3863_s2 + $0x150] sm:$0xff]  ;;  %2523 = vmatpush.msk.msrb.mxu3 %vm573_vm3, %v3261_v15 }
  0x45   : > { %787 = vmatpush.msrb.mxu1 %v2493_v49  ;;  %863 = vmatpush.msrb.mxu2 %v2518_v55  ;;  %v961_v49 = vld [vmem:[#allocation6 + $0x30] sm:$0xff]  ;;  %v959_v55 = vld [vmem:[#allocation6 + $0x20] sm:$0xff] }
  0x46   : > { %825 = vmatpush.msra.mxu0 %v562_v6  ;;  %v2507_v6 = vld [vmem:[%s3863_s2 + $0x138] sm:$0xff] }
  0x47   : > { %788 = vmatpush.msrb.mxu1 %v2492_v50  ;;  %864 = vmatpush.msrb.mxu2 %v2517_v57  ;;  %v1034_v57 = vld [vmem:[#allocation6 + $0x108] sm:$0xff] }
  0x48   : > { %826 = vmatpush.msra.mxu0 %v561_v7 }
  0x49   : > { %2484 = vmatmul.msk.f32.vlgmr.msrb.gmra.mxu0 %vm566_vm4, %v2481_v21  ;;  %789 = vmatpush.msrb.mxu1 %v2491_v51  ;;  %v3279_v21 = vld [vmem:[#allocation3 + $0x8] sm:$0xff]  ;;  %v904_v51 = vld [vmem:[%s3865_s4] sm:$0xff] }
  0x4a   : > { %827 = vmatpush.msra.mxu0 %v560_v8  ;;  %865 = vmatpush.msrb.mxu2 %v2516_v58  ;;  %v957_v58 = vld [vmem:[#allocation6 + $0x10] sm:$0xff] }
  0x4b   : > { %790 = vmatpush.msrb.mxu1 %v2490_v52  ;;  %v1036_v52 = vld [vmem:[#allocation6 + $0x118] sm:$0xff] }
  0x4c   : > { %828 = vmatpush.msra.mxu0 %v559_v9  ;;  %866 = vmatpush.msrb.mxu2 %v2515_v61  ;;  %v1031_v61 = vld [vmem:[#allocation6 + $0xf0] sm:$0xff] }
  0x4d   : > { %791 = vmatpush.msrb.mxu1 %v2489_v54  ;;  %v1035_v54 = vld [vmem:[#allocation6 + $0x110] sm:$0xff] }
  0x4e   : > { %867 = vmatpush.msrb.mxu2 %v2514_v62  ;;  %2530 = vmatpush.msk.msrb.mxu0 %vm573_vm3, %v3272_v17  ;;  %v1030_v62 = vld [vmem:[#allocation6 + $0xe8] sm:$0xff] }
  0x4f   : > { %792 = vmatpush.msrb.mxu1 %v2488_v56  ;;  %v958_v56 = vld [vmem:[#allocation6 + $0x18] sm:$0xff] }
  0x50   : > { %868 = vmatpush.msrb.mxu2 %v2513_v63  ;;  %1012 = vmatpush.msrb.mxu0 %v3276_v18  ;;  %v1029_v63 = vld [vmem:[#allocation6 + $0xe0] sm:$0xff] }
  0x51   : > { %2485 = vmatmul.msk.f32.gmra.mxu0 %vm566_vm4, %v2482_v34  ;;  %793 = vmatpush.msrb.mxu1 %v2487_v59  ;;  %v1033_v59 = vld [vmem:[#allocation6 + $0x100] sm:$0xff] }
  0x52   : > { %869 = vmatpush.msrb.mxu2 %v2512_v1  ;;  %1013 = vmatpush.msrb.mxu0 %v3279_v21  ;;  %v1028_v1 = vld [vmem:[#allocation6 + $0xd8] sm:$0xff] }
  0x53   : > { %794 = vmatpush.msrb.mxu1 %v2486_v60  ;;  %v1032_v60 = vld [vmem:[#allocation6 + $0xf8] sm:$0xff] }
  0x54   : > { %870 = vmatpush.msrb.mxu2 %v2511_v2  ;;  %v1027_v2 = vld [vmem:[#allocation6 + $0xd0] sm:$0xff] }
  0x55   : > { %2528 = vmatpush.msk.msra.mxu1 %vm573_vm3, %v3261_v15 }
  0x56   : > { %871 = vmatpush.msrb.mxu2 %v2510_v3  ;;  %v1026_v3 = vld [vmem:[#allocation6 + $0xc8] sm:$0xff] }
  0x58   : > { %872 = vmatpush.msrb.mxu2 %v2509_v4  ;;  %v1025_v4 = vld [vmem:[#allocation6 + $0xc0] sm:$0xff] }
  0x59   : > { %2505 = vmatmul.msk.f32.vlgmr.msra.gmra.mxu0 %vm566_vm4, %v2502_v43  ;;  %v964_v43 = vld [vmem:[#allocation6 + $0x48] sm:$0xff] }
  0x5a   : > { %873 = vmatpush.msrb.mxu2 %v2508_v5  ;;  %v1024_v5 = vld [vmem:[#allocation6 + $0xb8] sm:$0xff] }
  0x5c   : > { %874 = vmatpush.msrb.mxu2 %v2507_v6  ;;  %v1023_v6 = vld [vmem:[#allocation6 + $0xb0] sm:$0xff] }
  0x61   : > { %2506 = vmatmul.msk.f32.gmra.mxu0 %vm566_vm4, %v2503_v45  ;;  %v963_v45 = vld [vmem:[#allocation6 + $0x40] sm:$0xff]  ;;  %vm2352_vm4 = vcmask 253952  }
  0x69   : > { %2531 = vmatmul.msk.f32.vlgmr.msrb.gmra.mxu0 %vm905_vm8, %v2527_v23 }
  0xb6   : > { %v594_v7 = vpop.f32.mrf.mxu0  ;;  %v639_v8 = vpop.f32.mrf.mxu1 }
  0xb7   : > { %2476 = vmatmul.msk.f32.vlgmr.msra.gmra.mxu2 %vm526_vm1, %v639_v8  ;;  %2479 = vmatmul.msk.f32.vlgmr.msra.gmra.mxu3 %vm526_vm1, %v594_v7  ;;  %v1022_v7 = vld [vmem:[#allocation6 + $0xa8] sm:$0xff]  ;;  %v1021_v8 = vld [vmem:[#allocation6 + $0xa0] sm:$0xff] }
  0xb8   : > { %1083 = vmatpush.msra.mxu2 %v970_v24  ;;  %v1181_v24 = vld [vmem:[#allocation6 + $0x180] sm:$0xff] }
  0xba   : > { %1084 = vmatpush.msra.mxu2 %v969_v26 }
  0xbc   : > { %1085 = vmatpush.msra.mxu2 %v968_v30 }
  0xbe   : > { %v597_v9 = vpop.f32.mrf.mxu0  ;;  %v642_v10 = vpop.f32.mrf.mxu1  ;;  %1086 = vmatpush.msra.mxu2 %v967_v33  ;;  %v1174_v33 = vld [vmem:[#allocation6 + $0x148] sm:$0xff] }
  0xbf   : > { %2477 = vmatmul.msk.f32.gmra.mxu2 %vm526_vm1, %v642_v10  ;;  %2480 = vmatmul.msk.f32.gmra.mxu3 %vm526_vm1, %v597_v9  ;;  %v1020_v9 = vld [vmem:[#allocation6 + $0x98] sm:$0xff]  ;;  %v1019_v10 = vld [vmem:[#allocation6 + $0x90] sm:$0xff] }
  0xc0   : > { %1087 = vmatpush.msra.mxu2 %v966_v36  ;;  %v1172_v36 = vld [vmem:[#allocation6 + $0x138] sm:$0xff] }
  0xc2   : > { %1088 = vmatpush.msra.mxu2 %v965_v39 }
  0xc4   : > { %1089 = vmatpush.msra.mxu2 %v964_v43  ;;  %v1290_v43 = vld [vmem:[#allocation6 + $0x218] sm:$0xff] }
  0xc6   : > { %v750_v11 = vpop.f32.mrf.mxu0  ;;  %1090 = vmatpush.msra.mxu2 %v963_v45  ;;  %v1288_v45 = vld [vmem:[#allocation6 + $0x208] sm:$0xff] }
  0xc7   : > { %2500 = vmatmul.msk.f32.vlgmr.msrb.gmra.mxu1 %vm526_vm1, %v750_v11  ;;  %v956_v11 = vld [vmem:[#allocation6 + $0x8] sm:$0xff] }
  0xc8   : > { %1091 = vmatpush.msra.mxu2 %v962_v47  ;;  %v1287_v47 = vld [vmem:[#allocation6 + $0x200] sm:$0xff] }
  0xca   : > { %1092 = vmatpush.msra.mxu2 %v961_v49  ;;  %v1286_v49 = vld [vmem:[#allocation6 + $0x1f8] sm:$0xff] }
  0xcc   : > { %1093 = vmatpush.msra.mxu2 %v960_v53  ;;  %v1284_v53 = vld [vmem:[#allocation6 + $0x1e8] sm:$0xff] }
  0xce   : > { %v753_v12 = vpop.f32.mrf.mxu0  ;;  %1094 = vmatpush.msra.mxu2 %v959_v55 }
  0xcf   : > { %2501 = vmatmul.msk.f32.gmra.mxu1 %vm526_vm1, %v753_v12  ;;  %v955_v12 = vld [vmem:[#allocation6] sm:$0xff] }
  0xd0   : > { %1095 = vmatpush.msra.mxu2 %v958_v56  ;;  %v1283_v56 = vld [vmem:[#allocation6 + $0x1e0] sm:$0xff] }
  0xd2   : > { %1096 = vmatpush.msra.mxu2 %v957_v58 }
  0xd4   : > { %1097 = vmatpush.msra.mxu2 %v956_v11  ;;  %v1481_v11 = vld [vmem:[#allocation9 + $0x100] sm:$0xff] }
  0xd6   : > { %v830_v13 = vpop.f32.mrf.mxu0  ;;  %1098 = vmatpush.msra.mxu2 %v955_v12  ;;  %v1480_v12 = vld [vmem:[#allocation9 + $0xf8] sm:$0xff] }
  0xd7   : > { %2521 = vmatmul.msk.f32.vlgmr.msrb.gmra.mxu2 %vm526_vm1, %v830_v13  ;;  %v972_v13 = vld [vmem:[#allocation6 + $0x88] sm:$0xff] }
  0xd8   : > { %1117 = vmatpush.msra.mxu0 %v972_v13  ;;  %v1479_v13 = vld [vmem:[#allocation9 + $0xf0] sm:$0xff] }
  0xde   : > { %v833_v14 = vpop.f32.mrf.mxu0 }
  0xdf   : > { %2522 = vmatmul.msk.f32.gmra.mxu2 %vm526_vm1, %v833_v14 }
  0xe6   : > { %v1015_v14 = vpop.f32.mrf.mxu0 }
 0x13a   : > { %v686_v16 = vpop.f32.mrf.mxu2  ;;  %v718_v19 = vpop.f32.mrf.mxu3 }
 0x13b   : > { %v719_v25 = vadd.f32 %v718_v19, %v686_v16  ;;  %v971_v16 = vld [vmem:[#allocation6 + $0x80] sm:$0xff]  ;;  %v2534_v19 = vld [vmem:[%s3865_s4 + $0x10] sm:$0xff] }
 0x13c   : > { %1118 = vmatpush.msra.mxu0 %v971_v16  ;;  %v1478_v16 = vld [vmem:[#allocation9 + $0xe8] sm:$0xff] }
 0x13e   : > { %2537 = vmatpush.msk.msrb.mxu0 %vm573_vm3, %v3272_v17 }
 0x140   : > { %1162 = vmatpush.msrb.mxu0 %v3276_v18 }
 0x142   : > { %v689_v20 = vpop.f32.mrf.mxu2  ;;  %v721_v32 = vpop.f32.mrf.mxu3  ;;  %1163 = vmatpush.msrb.mxu0 %v3279_v21 }
 0x143   : > { %v722_v37 = vadd.f32 %v721_v32, %v689_v20  ;;  %v1184_v20 = vld [vmem:[#allocation6 + $0x198] sm:$0xff]  ;;  %v1175_v32 = vld [vmem:[#allocation6 + $0x150] sm:$0xff] }
 0x144   : > { %v796_v22 = vpop.f32.mrf.mxu1 }
 0x145   : > { %v802_v27 = vadd.f32 %v796_v22, %v719_v25  ;;  %v1183_v22 = vld [vmem:[#allocation6 + $0x190] sm:$0xff] }
 0x14c   : > { %v799_v35 = vpop.f32.mrf.mxu1 }
 0x14d   : > { %v803_v40 = vadd.f32 %v799_v35, %v722_v37  ;;  %v1173_v35 = vld [vmem:[#allocation6 + $0x140] sm:$0xff]  ;;  %v1171_v37 = vld [vmem:[#allocation6 + $0x130] sm:$0xff] }
 0x15a   : > { %v876_v29 = vpop.f32.mrf.mxu2 }
 0x15b   : > { %v882_v31 = vadd.f32 %v876_v29, %v802_v27  ;;  %v1178_v27 = vld [vmem:[#allocation6 + $0x168] sm:$0xff] }
 0x15c   : > { %v1186_v29 = vld [vmem:[#allocation6 + $0x1a8] sm:$0xff] }
 0x15d   : > { %v888_v34 = vadd.f32 %v2746_v28, %v882_v31  ;;  %v1185_v31 = vld [vmem:[#allocation6 + $0x1a0] sm:$0xff] }
 0x15f   : > { %vm890_vm9 = vcmp.ge.f32.partialorder %v888_v34, 0.0  ;;  %v892_v38 = vmul.f32 0.2, %v888_v34 }
 0x161   : > { %v3289_v41 = vsel %vm890_vm9, %v888_v34, %v892_v38  ;;  %v1170_v38 = vld [vmem:[#allocation6 + $0x128] sm:$0xff] }
 0x162   : > { %v879_v42 = vpop.f32.mrf.mxu2 }
 0x163   : > { %v883_v44 = vadd.f32 %v879_v42, %v803_v40  ;;  %v1169_v40 = vld [vmem:[#allocation6 + $0x120] sm:$0xff] }
 0x164   : > { %v1291_v42 = vld [vmem:[#allocation6 + $0x220] sm:$0xff] }
 0x165   : > { %v889_v46 = vadd.f32 %v2746_v28, %v883_v44  ;;  %v1176_v28 = vld [vmem:[#allocation6 + $0x158] sm:$0xff]  ;;  %v1289_v44 = vld [vmem:[#allocation6 + $0x210] sm:$0xff] }
 0x167   : > { %vm891_vm10 = vcmp.ge.f32.partialorder %v889_v46, 0.0  ;;  %v893_v48 = vmul.f32 0.2, %v889_v46 }
 0x169   : > { %v3291_v50 = vsel %vm891_vm10, %v889_v46, %v893_v48 }
 0x16a   : > { %929 = vmatpush.msrb.mxu3 %v3291_v50  ;;  %992 = vmatpush.msra.mxu1 %v3291_v50 }
 0x16c   : > { %930 = vmatpush.msrb.mxu3 %v3289_v41  ;;  %993 = vmatpush.msra.mxu1 %v3289_v41 }
 0x16d   : > { %2524 = vmatmul.msk.f32.vlgmr.msrb.gmra.mxu3 %vm905_vm8, %v904_v51  ;;  %2529 = vmatmul.msk.f32.vlgmr.msra.gmra.mxu1 %vm905_vm8, %v2527_v23  ;;  %v1182_v23 = vld [vmem:[#allocation6 + $0x188] sm:$0xff] }
 0x16e   : > { %1074 = vmatpush.msrb.mxu1 %v1036_v52  ;;  %2525 = vmatpush.msk.msra.mxu3 %vm573_vm3, %v3272_v17 }
 0x170   : > { %1075 = vmatpush.msrb.mxu1 %v1035_v54  ;;  %949 = vmatpush.msra.mxu3 %v3276_v18 }
 0x172   : > { %2535 = vmatpush.msk.msra.mxu1 %vm573_vm3, %v3261_v15  ;;  %950 = vmatpush.msra.mxu3 %v3279_v21 }
 0x174   : > { %1142 = vmatpush.msra.mxu1 %v3291_v50  ;;  %1040 = vmatpush.msrb.mxu3 %v1034_v57  ;;  %v1282_v57 = vld [vmem:[#allocation6 + $0x1d8] sm:$0xff] }
 0x175   : > { %2526 = vmatmul.msk.f32.vlgmr.msra.gmra.mxu3 %vm905_vm8, %v904_v51  ;;  %2532 = vmatmul.msk.f32.vlgmr.msrb.gmra.mxu1 %vm534_vm7, %v1015_v14 }
 0x176   : > { %1143 = vmatpush.msra.mxu1 %v3289_v41  ;;  %1041 = vmatpush.msrb.mxu3 %v1033_v59  ;;  %v1281_v59 = vld [vmem:[#allocation6 + $0x1d0] sm:$0xff] }
 0x178   : > { %1042 = vmatpush.msrb.mxu3 %v1032_v60  ;;  %1190 = vmatpush.msrb.mxu1 %v1184_v20  ;;  %v1280_v60 = vld [vmem:[#allocation6 + $0x1c8] sm:$0xff] }
 0x17a   : > { %1043 = vmatpush.msrb.mxu3 %v1031_v61  ;;  %1191 = vmatpush.msrb.mxu1 %v1183_v22  ;;  %v1279_v61 = vld [vmem:[#allocation6 + $0x1c0] sm:$0xff] }
 0x17b   : > { %v1477_v22 = vld [vmem:[#allocation9 + $0xe0] sm:$0xff] }
 0x17c   : > { %1044 = vmatpush.msrb.mxu3 %v1030_v62  ;;  %1192 = vmatpush.msrb.mxu1 %v1182_v23  ;;  %v1278_v62 = vld [vmem:[#allocation6 + $0x1b8] sm:$0xff] }
 0x17d   : > { %2536 = vmatmul.msk.f32.vlgmr.msra.gmra.mxu1 %vm905_vm8, %v2534_v19 }
 0x17e   : > { %1045 = vmatpush.msrb.mxu3 %v1029_v63  ;;  %1193 = vmatpush.msrb.mxu1 %v1181_v24  ;;  %v1277_v63 = vld [vmem:[#allocation6 + $0x1b0] sm:$0xff] }
 0x180   : > { %1046 = vmatpush.msrb.mxu3 %v1028_v1  ;;  %v1294_v1 = vld [vmem:[#allocation6 + $0x238] sm:$0xff] }
 0x182   : > { %1047 = vmatpush.msrb.mxu3 %v1027_v2  ;;  %v1293_v2 = vld [vmem:[#allocation6 + $0x230] sm:$0xff] }
 0x184   : > { %1048 = vmatpush.msrb.mxu3 %v1026_v3 }
 0x186   : > { %1049 = vmatpush.msrb.mxu3 %v1025_v4  ;;  %v3340_v4 = vld [vmem:[#allocation4 + $0x18] sm:$0x3] }
 0x188   : > { %1050 = vmatpush.msrb.mxu3 %v1024_v5  ;;  %v3344_v5 = vld [vmem:[#allocation4 + $0x8] sm:$0xff] }
 0x18a   : > { %1051 = vmatpush.msrb.mxu3 %v1023_v6  ;;  %v3349_v6 = vld [vmem:[%s3868_s7 + $0x4] sm:$0xf] }
 0x18c   : > { %1052 = vmatpush.msrb.mxu3 %v1022_v7  ;;  %v1352_v7 = vld [vmem:[%s3868_s7] sm:$0xf] }
 0x18e   : > { %1053 = vmatpush.msrb.mxu3 %v1021_v8  ;;  %v1484_v8 = vld [vmem:[#allocation9 + $0x118] sm:$0xff] }
 0x190   : > { %1054 = vmatpush.msrb.mxu3 %v1020_v9  ;;  %v1483_v9 = vld [vmem:[#allocation9 + $0x110] sm:$0xff] }
 0x192   : > { %1055 = vmatpush.msrb.mxu3 %v1019_v10  ;;  %v1482_v10 = vld [vmem:[#allocation9 + $0x108] sm:$0xff] }
 0x194   : > { %2543 = vmatpush.msk.msra.mxu3 %vm573_vm3, %v3272_v17  ;;  %v1180_v17 = vld [vmem:[#allocation6 + $0x178] sm:$0xff] }
 0x195   : > { %1194 = vmatpush.msrb.mxu1 %v1180_v17  ;;  %v1475_v17 = vld [vmem:[#allocation9 + $0xd0] sm:$0xff] }
 0x196   : > { %1270 = vmatpush.msra.mxu3 %v3276_v18  ;;  %v1179_v18 = vld [vmem:[#allocation6 + $0x170] sm:$0xff] }
 0x197   : > { %1195 = vmatpush.msrb.mxu1 %v1179_v18  ;;  %v1474_v18 = vld [vmem:[#allocation9 + $0xc8] sm:$0xff] }
 0x198   : > { %1271 = vmatpush.msra.mxu3 %v3279_v21  ;;  %v1177_v21 = vld [vmem:[#allocation6 + $0x160] sm:$0xff] }
 0x199   : > { %1196 = vmatpush.msrb.mxu1 %v1178_v27  ;;  %v1472_v27 = vld [vmem:[#allocation9 + $0xb8] sm:$0xff] }
 0x19b   : > { %1197 = vmatpush.msrb.mxu1 %v1177_v21  ;;  %v1471_v21 = vld [vmem:[#allocation9 + $0xb0] sm:$0xff] }
 0x19d   : > { %1198 = vmatpush.msrb.mxu1 %v1176_v28  ;;  %v1470_v28 = vld [vmem:[#allocation9 + $0xa8] sm:$0xff] }
 0x19f   : > { %1199 = vmatpush.msrb.mxu1 %v1175_v32 }
 0x1a1   : > { %1200 = vmatpush.msrb.mxu1 %v1174_v33 }
 0x1a3   : > { %1201 = vmatpush.msrb.mxu1 %v1173_v35 }
 0x1a5   : > { %1202 = vmatpush.msrb.mxu1 %v1172_v36 }
 0x1a7   : > { %1203 = vmatpush.msrb.mxu1 %v1171_v37 }
 0x1a9   : > { %1204 = vmatpush.msrb.mxu1 %v1170_v38 }
 0x1ab   : > { %1205 = vmatpush.msrb.mxu1 %v1169_v40  ;;  %v1418_v40 = vld [vmem:[#allocation9 + $0x78] sm:$0xff] }
 0x1ad   : > { %2553 = vmatpush.msk.msra.mxu1 %vm573_vm3, %v3340_v4 }
 0x1af   : > { %1463 = vmatpush.msra.mxu1 %v3344_v5 }
 0x1ea   : > { %v995_v25 = vpop.f32.mrf.mxu1 }
 0x1eb   : > { %1056 = vmatmul.f32.vlgmr.msrb.gmra.mxu3 %v995_v25  ;;  %v1476_v25 = vld [vmem:[#allocation9 + $0xd8] sm:$0xff] }
 0x1f0   : > { %v932_v26 = vpop.f32.mrf.mxu3 }
 0x1f1   : > { %1099 = vmatmul.f32.vlgmr.msra.gmra.mxu2 %v932_v26  ;;  %v1473_v26 = vld [vmem:[#allocation9 + $0xc0] sm:$0xff] }
 0x1f2   : > { %v1077_v34 = vpop.f32.mrf.mxu1 }
 0x1f8   : > { %v952_v30 = vpop.f32.mrf.mxu3 }
 0x1f9   : > { %2533 = vmatmul.msk.f32.vlgmr.msra.gmra.mxu0 %vm534_vm7, %v952_v30  ;;  %v1350_v30 = vld [vmem:[#allocation4 + $0x10] sm:$0x3] }
 0x1fa   : > { %1224 = vmatpush.msra.mxu0 %v1186_v29  ;;  %v1145_v39 = vpop.f32.mrf.mxu1  ;;  %v1469_v29 = vld [vmem:[#allocation9 + $0xa0] sm:$0xff]  ;;  %2546 = vmatpush.msk.msrb.mxu3 %vm573_vm3, %v1350_v30 }
 0x1fb   : > { %1206 = vmatmul.f32.vlgmr.msrb.gmra.mxu1 %v1145_v39  ;;  %v2557_v39 = vld [vmem:[%s3868_s7 + $0x8] sm:$0xf] }
 0x1fc   : > { %1225 = vmatpush.msra.mxu0 %v1185_v31  ;;  %1535 = vmatpush.msrb.mxu1 %v1418_v40  ;;  %v1736_v40 = vld [vmem:[#allocation9 + $0x208] sm:$0xff] }
 0x201   : > { %2538 = vmatmul.msk.f32.vlgmr.msrb.gmra.mxu0 %vm905_vm8, %v2534_v19 }
 0x202   : > { %2541 = vmatpush.msk.msrb.mxu0 %vm573_vm3, %v3261_v15  ;;  %v2540_v15 = vld [vmem:[%s3865_s4 + $0x18] sm:$0xff] }
 0x203   : > { %2544 = vmatmul.msk.f32.vlgmr.msra.gmra.mxu3 %vm905_vm8, %v2540_v15  ;;  %2554 = vmatmul.msk.f32.vlgmr.msra.gmra.mxu1 %vm1353_vm13, %v3349_v6 }
 0x204   : > { %1250 = vmatpush.msrb.mxu0 %v3291_v50  ;;  %v1285_v50 = vld [vmem:[#allocation6 + $0x1f0] sm:$0xff] }
 0x206   : > { %1251 = vmatpush.msrb.mxu0 %v3289_v41  ;;  %v1292_v41 = vld [vmem:[#allocation6 + $0x228] sm:$0xff] }
 0x207   : > { %1298 = vmatpush.msrb.mxu2 %v1292_v41  ;;  %v1417_v41 = vld [vmem:[#allocation9 + $0x70] sm:$0xff] }
 0x208   : > { %1536 = vmatpush.msrb.mxu1 %v1417_v41 }
 0x209   : > { %1299 = vmatpush.msrb.mxu2 %v1291_v42  ;;  %v1487_v42 = vld [vmem:[#allocation9 + $0x130] sm:$0xff] }
 0x20b   : > { %1300 = vmatpush.msrb.mxu2 %v1290_v43  ;;  %v1416_v43 = vld [vmem:[#allocation9 + $0x68] sm:$0xff] }
 0x20c   : > { %1537 = vmatpush.msrb.mxu1 %v1416_v43  ;;  %v1750_v43 = vld [vmem:[#allocation9 + $0x278] sm:$0xff] }
 0x20d   : > { %1301 = vmatpush.msrb.mxu2 %v1289_v44  ;;  %v1415_v44 = vld [vmem:[#allocation9 + $0x60] sm:$0xff] }
 0x20e   : > { %1538 = vmatpush.msrb.mxu1 %v1415_v44  ;;  %v1733_v44 = vld [vmem:[#allocation9 + $0x1f0] sm:$0xff] }
 0x20f   : > { %1302 = vmatpush.msrb.mxu2 %v1288_v45  ;;  %v1486_v45 = vld [vmem:[#allocation9 + $0x128] sm:$0xff] }
 0x211   : > { %1303 = vmatpush.msrb.mxu2 %v1287_v47  ;;  %v1485_v47 = vld [vmem:[#allocation9 + $0x120] sm:$0xff] }
 0x213   : > { %1304 = vmatpush.msrb.mxu2 %v1286_v49  ;;  %v1413_v49 = vld [vmem:[#allocation9 + $0x50] sm:$0xff] }
 0x215   : > { %1305 = vmatpush.msrb.mxu2 %v1285_v50  ;;  %v1421_v50 = vld [vmem:[#allocation9 + $0x90] sm:$0xff] }
 0x217   : > { %1306 = vmatpush.msrb.mxu2 %v1284_v53  ;;  %v1411_v53 = vld [vmem:[#allocation9 + $0x40] sm:$0xff] }
 0x219   : > { %1307 = vmatpush.msrb.mxu2 %v1283_v56  ;;  %v1419_v56 = vld [vmem:[#allocation9 + $0x80] sm:$0xff] }
 0x21b   : > { %1308 = vmatpush.msrb.mxu2 %v1282_v57  ;;  %v1409_v57 = vld [vmem:[#allocation9 + $0x30] sm:$0xff] }
 0x21d   : > { %1309 = vmatpush.msrb.mxu2 %v1281_v59 }
 0x21f   : > { %1310 = vmatpush.msrb.mxu2 %v1280_v60  ;;  %v1407_v60 = vld [vmem:[#allocation9 + $0x20] sm:$0xff] }
 0x221   : > { %1311 = vmatpush.msrb.mxu2 %v1279_v61  ;;  %v1406_v61 = vld [vmem:[#allocation9 + $0x18] sm:$0xff] }
 0x223   : > { %1312 = vmatpush.msrb.mxu2 %v1278_v62  ;;  %v1405_v62 = vld [vmem:[#allocation9 + $0x10] sm:$0xff] }
 0x225   : > { %1313 = vmatpush.msrb.mxu2 %v1277_v63  ;;  %v1404_v63 = vld [vmem:[#allocation9 + $0x8] sm:$0xff] }
 0x227   : > { %2558 = vmatpush.msk.msra.mxu2 %vm573_vm3, %v1350_v30 }
 0x26e   : > { %v1057_v46 = vpop.f32.mrf.mxu3 }
 0x26f   : > { %v1078_v48 = vadd.f32 %v1077_v34, %v1057_v46  ;;  %v2747_v34 = vld [vmem:[%s3867_s6] ss:$0 sm:$0xff] }
 0x270   : > { %v1414_v46 = vld [vmem:[#allocation9 + $0x58] sm:$0xff] }
 0x271   : > { %1539 = vmatpush.msrb.mxu1 %v1414_v46  ;;  %v1732_v46 = vld [vmem:[#allocation9 + $0x1e8] sm:$0xff] }
 0x273   : > { %1540 = vmatpush.msrb.mxu1 %v1413_v49  ;;  %v1747_v49 = vld [vmem:[#allocation9 + $0x260] sm:$0xff] }
 0x274   : > { %v1100_v51 = vpop.f32.mrf.mxu2 }
 0x275   : > { %v1101_v52 = vadd.f32 %v1100_v51, %v1078_v48  ;;  %v1422_v48 = vld [vmem:[#allocation9 + $0x98] sm:$0xff]  ;;  %v1412_v51 = vld [vmem:[#allocation9 + $0x48] sm:$0xff] }
 0x276   : > { %v1120_v54 = vpop.f32.mrf.mxu0  ;;  %1541 = vmatpush.msrb.mxu1 %v1412_v51  ;;  %v2573_v51 = vld [vmem:[%s3871_s10 + $0x2] sm:$0x3] }
 0x277   : > { %v1121_v55 = vadd.f32 %v1120_v54, %v1101_v52  ;;  %v1420_v54 = vld [vmem:[#allocation9 + $0x88] sm:$0xff] }
 0x278   : > { %v1207_v14 = vpop.f32.mrf.mxu1  ;;  %1542 = vmatpush.msrb.mxu1 %v1411_v53 }
 0x27e   : > { %v1165_v58 = vpop.f32.mrf.mxu0 }
 0x27f   : > { %2539 = vmatmul.msk.f32.vlgmr.msra.gmra.mxu0 %vm534_vm7, %v1165_v58  ;;  %v1408_v58 = vld [vmem:[#allocation9 + $0x28] sm:$0xff] }
 0x280   : > { %1332 = vmatpush.msra.mxu0 %v1294_v1  ;;  %v1465_v52 = vpop.f32.mrf.mxu1  ;;  %v1403_v1 = vld [vmem:[#allocation9] sm:$0xff] }
 0x282   : > { %1333 = vmatpush.msra.mxu0 %v1293_v2  ;;  %v1636_v2 = vld [vmem:[#allocation9 + $0x1b8] sm:$0xff] }
 0x286   : > { %v1273_v3 = vpop.f32.mrf.mxu3 }
 0x287   : > { %2542 = vmatmul.msk.f32.vlgmr.msrb.gmra.mxu0 %vm905_vm8, %v2540_v15  ;;  %v1488_v15 = vld [vmem:[#allocation9 + $0x138] sm:$0xff] }
 0x288   : > { %2548 = vmatpush.msk.msrb.mxu0 %vm573_vm3, %v3340_v4 }
 0x28a   : > { %1398 = vmatpush.msrb.mxu0 %v3344_v5 }
 0x28f   : > { %2545 = vmatmul.msk.f32.vlgmr.msra.gmra.mxu0 %vm534_vm7, %v1273_v3  ;;  %v1635_v3 = vld [vmem:[#allocation9 + $0x1b0] sm:$0xff] }
 0x290   : > { %1492 = vmatpush.msra.mxu0 %v1484_v8  ;;  %v1632_v8 = vld [vmem:[#allocation9 + $0x198] sm:$0xff] }
 0x292   : > { %1493 = vmatpush.msra.mxu0 %v1483_v9  ;;  %v1631_v9 = vld [vmem:[#allocation9 + $0x190] sm:$0xff] }
 0x294   : > { %1494 = vmatpush.msra.mxu0 %v1482_v10  ;;  %v1630_v10 = vld [vmem:[#allocation9 + $0x188] sm:$0xff] }
 0x296   : > { %1495 = vmatpush.msra.mxu0 %v1481_v11  ;;  %v1629_v11 = vld [vmem:[#allocation9 + $0x180] sm:$0xff] }
 0x297   : > { %2549 = vmatmul.msk.f32.vlgmr.msrb.gmra.mxu0 %vm1353_vm13, %v1352_v7 }
 0x298   : > { %1496 = vmatpush.msra.mxu0 %v1480_v12  ;;  %v1628_v12 = vld [vmem:[#allocation9 + $0x178] sm:$0xff] }
 0x29a   : > { %1497 = vmatpush.msra.mxu0 %v1479_v13  ;;  %v1627_v13 = vld [vmem:[#allocation9 + $0x170] sm:$0xff] }
 0x29c   : > { %1498 = vmatpush.msra.mxu0 %v1478_v16  ;;  %v1625_v16 = vld [vmem:[#allocation9 + $0x160] sm:$0xff] }
 0x29e   : > { %1499 = vmatpush.msra.mxu0 %v1477_v22  ;;  %v1639_v22 = vld [vmem:[#allocation9 + $0x1d0] sm:$0xff] }
 0x2a0   : > { %1500 = vmatpush.msra.mxu0 %v1476_v25  ;;  %v1622_v25 = vld [vmem:[#allocation9 + $0x148] sm:$0xff] }
 0x2a2   : > { %1501 = vmatpush.msra.mxu0 %v1475_v17 }
 0x2a4   : > { %1502 = vmatpush.msra.mxu0 %v1474_v18  ;;  %v1621_v18 = vld [vmem:[#allocation9 + $0x140] sm:$0xff] }
 0x2a6   : > { %1503 = vmatpush.msra.mxu0 %v1473_v26  ;;  %v1637_v26 = vld [vmem:[#allocation9 + $0x1c0] sm:$0xff] }
 0x2a8   : > { %1504 = vmatpush.msra.mxu0 %v1472_v27 }
 0x2aa   : > { %1505 = vmatpush.msra.mxu0 %v1471_v21 }
 0x2ac   : > { %1506 = vmatpush.msra.mxu0 %v1470_v28 }
 0x2ae   : > { %1507 = vmatpush.msra.mxu0 %v1469_v29  ;;  %v2563_v29 = vld [vmem:[%s3868_s7 + $0xc] sm:$0xf] }
 0x2b0   : > { %2564 = vmatpush.msk.msrb.mxu0 %vm573_vm3, %v1350_v30 }
 0x2fc   : > { %v1227_v19 = vpop.f32.mrf.mxu0 }
 0x2fd   : > { %v1228_v20 = vadd.f32 %v1227_v19, %v1207_v14  ;;  %v1626_v14 = vld [vmem:[#allocation9 + $0x168] sm:$0xff]  ;;  %v1624_v19 = vld [vmem:[#allocation9 + $0x158] sm:$0xff] }
 0x2ff   : > { %v1230_v23 = vadd.f32 %v1228_v20, %v1121_v55  ;;  %v1410_v55 = vld [vmem:[#allocation9 + $0x38] sm:$0xff] }
 0x300   : > { %1543 = vmatpush.msrb.mxu1 %v1410_v55  ;;  %v1640_v20 = vld [vmem:[#allocation9 + $0x1d8] sm:$0xff] }
 0x302   : > { %1544 = vmatpush.msrb.mxu1 %v1409_v57 }
 0x304   : > { %v1253_v24 = vpop.f32.mrf.mxu0  ;;  %1545 = vmatpush.msrb.mxu1 %v1408_v58 }
 0x305   : > { %1314 = vmatmul.f32.vlgmr.msrb.gmra.mxu2 %v1253_v24  ;;  %v1638_v24 = vld [vmem:[#allocation9 + $0x1c8] sm:$0xff] }
 0x306   : > { %1546 = vmatpush.msrb.mxu1 %v1407_v60 }
 0x308   : > { %1547 = vmatpush.msrb.mxu1 %v1406_v61  ;;  %v1806_v61 = vld [vmem:[%s3871_s10] sm:$0x3] }
 0x30a   : > { %1548 = vmatpush.msrb.mxu1 %v1405_v62 }
 0x30c   : > { %v1335_v31 = vpop.f32.mrf.mxu0  ;;  %1549 = vmatpush.msrb.mxu1 %v1404_v63 }
 0x30e   : > { %1550 = vmatpush.msrb.mxu1 %v1403_v1 }
 0x314   : > { %v1400_v59 = vpop.f32.mrf.mxu0 }
 0x388   : > { %v1315_v32 = vpop.f32.mrf.mxu2 }
 0x389   : > { %v1336_v33 = vadd.f32 %v1335_v31, %v1315_v32  ;;  %v1746_v32 = vld [vmem:[#allocation9 + $0x258] sm:$0xff] }
 0x38a   : > { %1754 = vmatpush.msra.mxu1 %v1746_v32  ;;  %v1865_v32 = vld [vmem:[%s3872_s11 + $0x40] sm:$0xff] }
 0x38b   : > { %v1338_v35 = vadd.f32 %v1336_v33, %v1230_v23  ;;  %v1623_v23 = vld [vmem:[#allocation9 + $0x150] sm:$0xff] }
 0x38c   : > { %v1745_v33 = vld [vmem:[#allocation9 + $0x250] sm:$0xff] }
 0x38d   : > { %v1343_v36 = vadd.f32 %v2747_v34, %v1338_v35  ;;  %1755 = vmatpush.msra.mxu1 %v1745_v33  ;;  %v1742_v34 = vld [vmem:[#allocation9 + $0x238] sm:$0xff]  ;;  %v1741_v35 = vld [vmem:[#allocation9 + $0x230] sm:$0xff] }
 0x38f   : > { %vm1344_vm14 = vcmp.ge.f32.partialorder %v1343_v36, 0.0  ;;  %v1345_v37 = vmul.f32 0.2, %v1343_v36 }
 0x391   : > { %v1346_v38 = vsel %vm1344_vm14, %v1343_v36, %v1345_v37  ;;  %v1740_v36 = vld [vmem:[#allocation9 + $0x228] sm:$0xff]  ;;  %v1739_v37 = vld [vmem:[#allocation9 + $0x220] sm:$0xff] }
 0x392   : > { %1378 = vmatpush.msrb.mxu3 %v1346_v38  ;;  %1595 = vmatpush.msra.mxu2 %v1346_v38 }
 0x393   : > { %1705 = vmatpush.msrb.mxu0 %v1346_v38  ;;  %2547 = vmatmul.msk.f32.vlgmr.msrb.gmra.mxu3 %vm1353_vm13, %v1352_v7  ;;  %v1633_v7 = vld [vmem:[#allocation9 + $0x1a0] sm:$0xff] }
 0x394   : > { %2551 = vmatpush.msk.msra.mxu3 %vm573_vm3, %v1350_v30  ;;  %2559 = vmatmul.msk.f32.vlgmr.msra.gmra.mxu2 %vm1353_vm13, %v2557_v39 }
 0x395   : > { %1644 = vmatpush.msrb.mxu2 %v1636_v2  ;;  %v2748_v2 = vld [vmem:[%s3870_s9] ss:$0 sm:$0xff] }
 0x396   : > { %1443 = vmatpush.msra.mxu3 %v1346_v38  ;;  %v1738_v38 = vld [vmem:[#allocation9 + $0x218] sm:$0xff] }
 0x397   : > { %1645 = vmatpush.msrb.mxu2 %v1635_v3 }
 0x398   : > { %1524 = vmatpush.msrb.mxu3 %v1488_v15  ;;  %v1735_v15 = vld [vmem:[#allocation9 + $0x200] sm:$0xff] }
 0x39a   : > { %1525 = vmatpush.msrb.mxu3 %v1487_v42  ;;  %v1734_v42 = vld [vmem:[#allocation9 + $0x1f8] sm:$0xff] }
 0x39b   : > { %2552 = vmatmul.msk.f32.vlgmr.msra.gmra.mxu3 %vm1353_vm13, %v3349_v6  ;;  %v1634_v6 = vld [vmem:[#allocation9 + $0x1a8] sm:$0xff] }
 0x39c   : > { %1526 = vmatpush.msrb.mxu3 %v1486_v45  ;;  %1646 = vmatpush.msrb.mxu2 %v1634_v6  ;;  %v1749_v45 = vld [vmem:[#allocation9 + $0x270] sm:$0xff] }
 0x39e   : > { %1527 = vmatpush.msrb.mxu3 %v1485_v47  ;;  %1647 = vmatpush.msrb.mxu2 %v1633_v7  ;;  %v1748_v47 = vld [vmem:[#allocation9 + $0x268] sm:$0xff] }
 0x3a0   : > { %1567 = vmatpush.msra.mxu3 %v1422_v48  ;;  %1648 = vmatpush.msrb.mxu2 %v1632_v8  ;;  %v1731_v48 = vld [vmem:[#allocation9 + $0x1e0] sm:$0xff] }
 0x3a2   : > { %1568 = vmatpush.msra.mxu3 %v1421_v50  ;;  %1649 = vmatpush.msrb.mxu2 %v1631_v9 }
 0x3a3   : > { %2555 = vmatmul.msk.f32.vlgmr.msrb.gmra.mxu3 %vm542_vm12, %v1465_v52  ;;  %v3394_v52 = vld [vmem:[#allocation5 + $0x8] sm:$0x3f] }
 0x3a4   : > { %1569 = vmatpush.msra.mxu3 %v1420_v54  ;;  %1650 = vmatpush.msrb.mxu2 %v1630_v10  ;;  %v2601_v10 = vld [vmem:[%s3872_s11 + $0x178] sm:$0xff] }
 0x3a6   : > { %1570 = vmatpush.msra.mxu3 %v1419_v56  ;;  %1651 = vmatpush.msrb.mxu2 %v1629_v11  ;;  %v2600_v11 = vld [vmem:[%s3872_s11 + $0x170] sm:$0xff] }
 0x3a8   : > { %2560 = vmatpush.msk.msrb.mxu3 %vm573_vm3, %v3340_v4  ;;  %1652 = vmatpush.msrb.mxu2 %v1628_v12  ;;  %v1872_v12 = vld [vmem:[%s3872_s11 + $0x78] sm:$0xff] }
 0x3aa   : > { %1615 = vmatpush.msrb.mxu3 %v3344_v5  ;;  %1653 = vmatpush.msrb.mxu2 %v1627_v13  ;;  %v1871_v13 = vld [vmem:[%s3872_s11 + $0x70] sm:$0xff] }
 0x3ab   : > { %2556 = vmatmul.msk.f32.vlgmr.msra.gmra.mxu3 %vm542_vm12, %v1400_v59 }
 0x3ac   : > { %1654 = vmatpush.msrb.mxu2 %v1626_v14  ;;  %1676 = vmatpush.msra.mxu3 %v1640_v20  ;;  %v2599_v14 = vld [vmem:[%s3872_s11 + $0x168] sm:$0xff]  ;;  %v2592_v20 = vld [vmem:[%s3872_s11 + $0x130] sm:$0xff] }
 0x3ae   : > { %1655 = vmatpush.msrb.mxu2 %v1625_v16  ;;  %1677 = vmatpush.msra.mxu3 %v1639_v22  ;;  %v1870_v16 = vld [vmem:[%s3872_s11 + $0x68] sm:$0xff]  ;;  %v2598_v22 = vld [vmem:[%s3872_s11 + $0x160] sm:$0xff] }
 0x3b0   : > { %1656 = vmatpush.msrb.mxu2 %v1624_v19  ;;  %1678 = vmatpush.msra.mxu3 %v1638_v24  ;;  %v2593_v19 = vld [vmem:[%s3872_s11 + $0x138] sm:$0xff]  ;;  %v2591_v24 = vld [vmem:[%s3872_s11 + $0x128] sm:$0xff] }
 0x3b2   : > { %1657 = vmatpush.msrb.mxu2 %v1623_v23  ;;  %1679 = vmatpush.msra.mxu3 %v1637_v26  ;;  %v1869_v23 = vld [vmem:[%s3872_s11 + $0x60] sm:$0xff]  ;;  %v2596_v26 = vld [vmem:[%s3872_s11 + $0x150] sm:$0xff] }
 0x3b3   : > { %2561 = vmatmul.msk.f32.vlgmr.msrb.gmra.mxu3 %vm1353_vm13, %v2557_v39  ;;  %v1737_v39 = vld [vmem:[#allocation9 + $0x210] sm:$0xff] }
 0x3b4   : > { %1658 = vmatpush.msrb.mxu2 %v1622_v25  ;;  %2566 = vmatpush.msk.msrb.mxu3 %vm573_vm3, %v3340_v4  ;;  %v1744_v4 = vld [vmem:[#allocation9 + $0x248] sm:$0xff]  ;;  %v2597_v25 = vld [vmem:[%s3872_s11 + $0x158] sm:$0xff] }
 0x3b5   : > { %1756 = vmatpush.msra.mxu1 %v1744_v4  ;;  %v2587_v4 = vld [vmem:[%s3872_s11 + $0x108] sm:$0xff] }
 0x3b6   : > { %1659 = vmatpush.msrb.mxu2 %v1621_v18  ;;  %1725 = vmatpush.msrb.mxu3 %v3344_v5  ;;  %v1743_v5 = vld [vmem:[#allocation9 + $0x240] sm:$0xff]  ;;  %v2590_v18 = vld [vmem:[%s3872_s11 + $0x120] sm:$0xff] }
 0x3b7   : > { %1757 = vmatpush.msra.mxu1 %v1743_v5  ;;  %v1864_v5 = vld [vmem:[%s3872_s11 + $0x38] sm:$0xff] }
 0x3b8   : > { %2576 = vmatpush.msk.msra.mxu2 %vm665_vm5, %v3394_v52 }
 0x3b9   : > { %1758 = vmatpush.msra.mxu1 %v1742_v34  ;;  %v2586_v34 = vld [vmem:[%s3872_s11 + $0x100] sm:$0xff] }
 0x3bb   : > { %1759 = vmatpush.msra.mxu1 %v1741_v35  ;;  %v1863_v35 = vld [vmem:[%s3872_s11 + $0x30] sm:$0xff] }
 0x3bd   : > { %1760 = vmatpush.msra.mxu1 %v1740_v36  ;;  %v2585_v36 = vld [vmem:[%s3872_s11 + $0xf8] sm:$0xff] }
 0x3bf   : > { %1761 = vmatpush.msra.mxu1 %v1739_v37  ;;  %v1862_v37 = vld [vmem:[%s3872_s11 + $0x28] sm:$0xff] }
 0x3c1   : > { %1762 = vmatpush.msra.mxu1 %v1738_v38  ;;  %v2584_v38 = vld [vmem:[%s3872_s11 + $0xf0] sm:$0xff] }
 0x3c3   : > { %1763 = vmatpush.msra.mxu1 %v1737_v39  ;;  %v1861_v39 = vld [vmem:[%s3872_s11 + $0x20] sm:$0xff] }
 0x3c5   : > { %1764 = vmatpush.msra.mxu1 %v1736_v40  ;;  %v2604_v40 = vld [vmem:[%s3871_s10 + $0x4] sm:$0x3] }
 0x3c7   : > { %1765 = vmatpush.msra.mxu1 %v1735_v15  ;;  %v2583_v15 = vld [vmem:[%s3872_s11 + $0xe8] sm:$0xff] }
 0x3c9   : > { %1766 = vmatpush.msra.mxu1 %v1734_v42  ;;  %v1859_v42 = vld [vmem:[%s3872_s11 + $0x10] sm:$0xff] }
 0x3cb   : > { %1767 = vmatpush.msra.mxu1 %v1733_v44  ;;  %v1857_v44 = vld [vmem:[%s3872_s11] sm:$0xff] }
 0x3cd   : > { %1768 = vmatpush.msra.mxu1 %v1732_v46  ;;  %v1879_v46 = vld [vmem:[%s3872_s11 + $0xb0] sm:$0xff] }
 0x3cf   : > { %1769 = vmatpush.msra.mxu1 %v1731_v48  ;;  %v2582_v48 = vld [vmem:[%s3872_s11 + $0xe0] sm:$0xff] }
 0x416   : > { %v1380_v17 = vpop.f32.mrf.mxu3 }
 0x417   : > { %1551 = vmatmul.f32.vlgmr.msrb.gmra.mxu1 %v1380_v17  ;;  %v1597_v27 = vpop.f32.mrf.mxu2  ;;  %v1868_v17 = vld [vmem:[%s3872_s11 + $0x58] sm:$0xff] }
 0x418   : > { %1660 = vmatmul.f32.vlgmr.msrb.gmra.mxu2 %v1597_v27  ;;  %v1867_v27 = vld [vmem:[%s3872_s11 + $0x50] sm:$0xff] }
 0x419   : > { %1998 = vmatpush.msrb.mxu2 %v1872_v12  ;;  %v2613_v12 = vld [vmem:[%s3872_s11 + $0x1a0] sm:$0xff] }
 0x41b   : > { %1999 = vmatpush.msrb.mxu2 %v1871_v13  ;;  %v2629_v13 = vld [vmem:[%s3872_s11 + $0x220] sm:$0xff] }
 0x41d   : > { %2000 = vmatpush.msrb.mxu2 %v1870_v16  ;;  %v2628_v16 = vld [vmem:[%s3872_s11 + $0x218] sm:$0xff] }
 0x41e   : > { %v1445_v21 = vpop.f32.mrf.mxu3 }
 0x41f   : > { %1508 = vmatmul.f32.vlgmr.msra.gmra.mxu0 %v1445_v21  ;;  %2001 = vmatpush.msrb.mxu2 %v1869_v23  ;;  %v2589_v21 = vld [vmem:[%s3872_s11 + $0x118] sm:$0xff]  ;;  %v2610_v23 = vld [vmem:[%s3872_s11 + $0x188] sm:$0xff] }
 0x420   : > { %1786 = vmatpush.msra.mxu0 %v1750_v43  ;;  %2577 = vmatmul.msk.f32.vlgmr.msra.gmra.mxu2 %vm1807_vm0, %v2573_v51  ;;  %v1858_v43 = vld [vmem:[%s3872_s11 + $0x8] sm:$0xff] }
 0x421   : > { %2002 = vmatpush.msrb.mxu2 %v1868_v17  ;;  %v2625_v17 = vld [vmem:[%s3872_s11 + $0x200] sm:$0xff] }
 0x422   : > { %1787 = vmatpush.msra.mxu0 %v1749_v45  ;;  %v1880_v45 = vld [vmem:[%s3872_s11 + $0xb8] sm:$0xff] }
 0x423   : > { %2003 = vmatpush.msrb.mxu2 %v1867_v27  ;;  %v2652_v27 = vld [vmem:[%s3872_s11 + $0x2a8] sm:$0xff] }
 0x424   : > { %1788 = vmatpush.msra.mxu0 %v1748_v47  ;;  %v1878_v47 = vld [vmem:[%s3872_s11 + $0xa8] sm:$0xff] }
 0x426   : > { %v1529_v28 = vpop.f32.mrf.mxu3  ;;  %1789 = vmatpush.msra.mxu0 %v1747_v49  ;;  %v1877_v49 = vld [vmem:[%s3872_s11 + $0xa0] sm:$0xff] }
 0x427   : > { %2565 = vmatmul.msk.f32.vlgmr.msrb.gmra.mxu0 %vm1353_vm13, %v2563_v29 }
 0x428   : > { %2571 = vmatpush.msk.msrb.mxu0 %vm665_vm5, %v3394_v52 }
 0x42e   : > { %v1572_v30 = vpop.f32.mrf.mxu3 }
 0x436   : > { %v1617_v31 = vpop.f32.mrf.mxu3 }
 0x437   : > { %2562 = vmatmul.msk.f32.vlgmr.msra.gmra.mxu3 %vm542_vm12, %v1617_v31  ;;  %v2594_v31 = vld [vmem:[%s3872_s11 + $0x140] sm:$0xff] }
 0x43f   : > { %2567 = vmatmul.msk.f32.vlgmr.msrb.gmra.mxu3 %vm1353_vm13, %v2563_v29  ;;  %v1866_v29 = vld [vmem:[%s3872_s11 + $0x48] sm:$0xff] }
 0x440   : > { %2004 = vmatpush.msrb.mxu2 %v1866_v29 }
 0x442   : > { %2005 = vmatpush.msrb.mxu2 %v1865_v32 }
 0x444   : > { %2006 = vmatpush.msrb.mxu2 %v1864_v5  ;;  %v2647_v5 = vld [vmem:[%s3872_s11 + $0x280] sm:$0xff] }
 0x446   : > { %2007 = vmatpush.msrb.mxu2 %v1863_v35  ;;  %v2662_v35 = vld [vmem:[%s3872_s11 + $0x2f8] sm:$0xff] }
 0x448   : > { %2008 = vmatpush.msrb.mxu2 %v1862_v37  ;;  %v2661_v37 = vld [vmem:[%s3872_s11 + $0x2f0] sm:$0xff] }
 0x44a   : > { %2009 = vmatpush.msrb.mxu2 %v1861_v39  ;;  %v2660_v39 = vld [vmem:[%s3872_s11 + $0x2e8] sm:$0xff] }
 0x494   : > { %v1552_v54 = vpop.f32.mrf.mxu1 }
 0x49b   : > { %v1661_v0 = vpop.f32.mrf.mxu2 }
 0x49c   : > { %v1509_v41 = vpop.f32.mrf.mxu0 }
 0x49d   : > { %v1530_v53 = vadd.f32 %v1529_v28, %v1509_v41  ;;  %v2595_v28 = vld [vmem:[%s3872_s11 + $0x148] sm:$0xff]  ;;  %v1860_v41 = vld [vmem:[%s3872_s11 + $0x18] sm:$0xff] }
 0x49e   : > { %2010 = vmatpush.msrb.mxu2 %v1860_v41  ;;  %v2642_v41 = vld [vmem:[%s3872_s11 + $0x258] sm:$0xff] }
 0x49f   : > { %v1553_v55 = vadd.f32 %v1552_v54, %v1530_v53  ;;  %v2624_v53 = vld [vmem:[%s3872_s11 + $0x1f8] sm:$0xff]  ;;  %v2580_v54 = vld [vmem:[%s3872_s11 + $0xd0] sm:$0xff] }
 0x4a0   : > { %2011 = vmatpush.msrb.mxu2 %v1859_v42  ;;  %2111 = vmatpush.msrb.mxu1 %v2624_v53  ;;  %v2658_v42 = vld [vmem:[%s3872_s11 + $0x2d8] sm:$0xff]  ;;  %v2288_v53 = vld [vmem:[%s3874_s13 + $0x70] sm:$0xff] }
 0x4a1   : > { %v1573_v57 = vadd.f32 %v1572_v30, %v1553_v55  ;;  %v2588_v30 = vld [vmem:[%s3872_s11 + $0x110] sm:$0xff] }
 0x4a2   : > { %2012 = vmatpush.msrb.mxu2 %v1858_v43  ;;  %v1875_v55 = vld [vmem:[%s3872_s11 + $0x90] sm:$0xff] }
 0x4a3   : > { %v1923_v33 = vpop.f32.mrf.mxu2  ;;  %v2641_v43 = vld [vmem:[%s3872_s11 + $0x250] sm:$0xff] }
 0x4a4   : > { %v1707_v50 = vpop.f32.mrf.mxu0  ;;  %2013 = vmatpush.msrb.mxu2 %v1857_v44  ;;  %v2657_v44 = vld [vmem:[%s3872_s11 + $0x2d0] sm:$0xff] }
 0x4a5   : > { %1770 = vmatmul.f32.vlgmr.msra.gmra.mxu1 %v1707_v50  ;;  %v2581_v50 = vld [vmem:[%s3872_s11 + $0xd8] sm:$0xff] }
 0x4a6   : > { %2026 = vmatpush.msra.mxu2 %v1880_v45  ;;  %v2640_v45 = vld [vmem:[%s3872_s11 + $0x248] sm:$0xff] }
 0x4a8   : > { %2027 = vmatpush.msra.mxu2 %v1879_v46  ;;  %v2656_v46 = vld [vmem:[%s3872_s11 + $0x2c8] sm:$0xff] }
 0x4aa   : > { %2028 = vmatpush.msra.mxu2 %v1878_v47  ;;  %v2639_v47 = vld [vmem:[%s3872_s11 + $0x240] sm:$0xff] }
 0x4ac   : > { %2029 = vmatpush.msra.mxu2 %v1877_v49 }
 0x4ba   : > { %v1681_v56 = vpop.f32.mrf.mxu3 }
 0x4bb   : > { %v1682_v58 = vadd.f32 %v1681_v56, %v1661_v0  ;;  %v2623_v0 = vld [vmem:[%s3872_s11 + $0x1f0] sm:$0xff]  ;;  %v2622_v56 = vld [vmem:[%s3872_s11 + $0x1e8] sm:$0xff] }
 0x4bc   : > { %2112 = vmatpush.msrb.mxu1 %v2623_v0  ;;  %v2287_v0 = vld [vmem:[%s3874_s13 + $0x68] sm:$0xff] }
 0x4bd   : > { %v1684_v59 = vadd.f32 %v1682_v58, %v1573_v57  ;;  %v2579_v57 = vld [vmem:[%s3872_s11 + $0xc8] sm:$0xff] }
 0x4be   : > { %v1874_v58 = vld [vmem:[%s3872_s11 + $0x88] sm:$0xff]  ;;  %2113 = vmatpush.msrb.mxu1 %v2622_v56 }
 0x4bf   : > { %v2677_v56 = vld [vmem:[%s3874_s13 + $0xe8] sm:$0xff] }
 0x4c2   : > { %v1727_v60 = vpop.f32.mrf.mxu3 }
 0x4c3   : > { %2568 = vmatmul.msk.f32.vlgmr.msra.gmra.mxu0 %vm542_vm12, %v1727_v60  ;;  %v1873_v60 = vld [vmem:[%s3872_s11 + $0x80] sm:$0xff] }
 0x4c4   : > { %1955 = vmatpush.msra.mxu0 %v2593_v19  ;;  %v2627_v19 = vld [vmem:[%s3872_s11 + $0x210] sm:$0xff] }
 0x4c6   : > { %1956 = vmatpush.msra.mxu0 %v2592_v20  ;;  %v2611_v20 = vld [vmem:[%s3872_s11 + $0x190] sm:$0xff] }
 0x4c8   : > { %1957 = vmatpush.msra.mxu0 %v2591_v24 }
 0x4ca   : > { %1958 = vmatpush.msra.mxu0 %v2590_v18  ;;  %v2654_v18 = vld [vmem:[%s3872_s11 + $0x2b8] sm:$0xff] }
 0x4cb   : > { %2572 = vmatmul.msk.f32.vlgmr.msrb.gmra.mxu0 %vm1807_vm0, %v1806_v61 }
 0x4cc   : > { %1959 = vmatpush.msra.mxu0 %v2589_v21 }
 0x4ce   : > { %1960 = vmatpush.msra.mxu0 %v2588_v30  ;;  %v2649_v30 = vld [vmem:[%s3872_s11 + $0x290] sm:$0xff] }
 0x4d0   : > { %1961 = vmatpush.msra.mxu0 %v2587_v4 }
 0x4d2   : > { %1962 = vmatpush.msra.mxu0 %v2586_v34  ;;  %v2646_v34 = vld [vmem:[%s3872_s11 + $0x278] sm:$0xff] }
 0x4d4   : > { %1963 = vmatpush.msra.mxu0 %v2585_v36  ;;  %v2645_v36 = vld [vmem:[%s3872_s11 + $0x270] sm:$0xff] }
 0x4d6   : > { %1964 = vmatpush.msra.mxu0 %v2584_v38  ;;  %v2644_v38 = vld [vmem:[%s3872_s11 + $0x268] sm:$0xff] }
 0x4d8   : > { %1965 = vmatpush.msra.mxu0 %v2583_v15  ;;  %v2659_v15 = vld [vmem:[%s3872_s11 + $0x2e0] sm:$0xff] }
 0x4da   : > { %1966 = vmatpush.msra.mxu0 %v2582_v48  ;;  %v2655_v48 = vld [vmem:[%s3872_s11 + $0x2c0] sm:$0xff] }
 0x4dc   : > { %1967 = vmatpush.msra.mxu0 %v2581_v50  ;;  %v2289_v50 = vld [vmem:[%s3874_s13 + $0x78] sm:$0xff] }
 0x4de   : > { %1968 = vmatpush.msra.mxu0 %v2580_v54  ;;  %v2678_v54 = vld [vmem:[%s3874_s13 + $0xf0] sm:$0xff] }
 0x4e0   : > { %1969 = vmatpush.msra.mxu0 %v2579_v57  ;;  %v2286_v57 = vld [vmem:[%s3874_s13 + $0x60] sm:$0xff] }
 0x522   : > { %v1771_v62 = vpop.f32.mrf.mxu1 }
 0x540   : > { %v1791_v63 = vpop.f32.mrf.mxu0 }
 0x541   : > { %v1792_v1 = vadd.f32 %v1791_v63, %v1771_v62  ;;  %v2620_v62 = vld [vmem:[%s3872_s11 + $0x1d8] sm:$0xff]  ;;  %v2619_v63 = vld [vmem:[%s3872_s11 + $0x1d0] sm:$0xff] }
 0x543   : > { %v1794_v3 = vadd.f32 %v1792_v1, %v1684_v59  ;;  %v2578_v59 = vld [vmem:[%s3872_s11 + $0xc0] sm:$0xff]  ;;  %v2618_v1 = vld [vmem:[%s3872_s11 + $0x1c8] sm:$0xff] }
 0x544   : > { %1970 = vmatpush.msra.mxu0 %v2578_v59 }
 0x545   : > { %v1799_v6 = vadd.f32 %v2748_v2, %v1794_v3  ;;  %v2617_v2 = vld [vmem:[%s3872_s11 + $0x1c0] sm:$0xff] }
 0x546   : > { %v2634_v3 = vld [vmem:[%s3871_s10 + $0x6] sm:$0x3] }
 0x547   : > { %vm1800_vm1 = vcmp.ge.f32.partialorder %v1799_v6, 0.0  ;;  %v1801_v7 = vmul.f32 0.2, %v1799_v6 }
 0x548   : > { %v1854_v21 = vpop.f32.mrf.mxu0 }
 0x549   : > { %v1802_v8 = vsel %vm1800_vm1, %v1799_v6, %v1801_v7  ;;  %v2616_v6 = vld [vmem:[%s3872_s11 + $0x1b8] sm:$0xff] }
 0x54a   : > { %1803 = vst [vmem:[#allocation5] sm:$0xf] %v1802_v8  ;;  %v2632_v7 = vld [vmem:[%s3872_s11 + $0x238] sm:$0xff]  ;;  %v2631_v8 = vld [vmem:[%s3872_s11 + $0x230] sm:$0xff] }
 0x54b   : > { %2139 = vmatpush.msrb.mxu0 %v2632_v7  ;;  %v2673_v7 = vld [vmem:[%s3874_s13 + $0xc8] sm:$0xff] }
 0x54d   : > { %2140 = vmatpush.msrb.mxu0 %v2631_v8 }
 0x551   : > { %v3409_v9 = vld [vmem:[#allocation5] sm:$0x3f] }
 0x552   : > { %2569 = vmatpush.msk.msra.mxu3 %vm665_vm5, %v3409_v9 }
 0x553   : > { %2570 = vmatmul.msk.f32.vlgmr.msra.gmra.mxu3 %vm1807_vm0, %v1806_v61  ;;  %v2621_v61 = vld [vmem:[%s3872_s11 + $0x1e0] sm:$0xff] }
 0x554   : > { %2574 = vmatpush.msk.msrb.mxu3 %vm665_vm5, %v3409_v9  ;;  %2114 = vmatpush.msrb.mxu1 %v2621_v61  ;;  %v2285_v61 = vld [vmem:[%s3874_s13 + $0x58] sm:$0xff] }
 0x556   : > { %1983 = vmatpush.msra.mxu3 %v2601_v10  ;;  %2115 = vmatpush.msrb.mxu1 %v2620_v62  ;;  %v2630_v10 = vld [vmem:[%s3872_s11 + $0x228] sm:$0xff]  ;;  %v2675_v62 = vld [vmem:[%s3874_s13 + $0xd8] sm:$0xff] }
 0x557   : > { %2141 = vmatpush.msrb.mxu0 %v2630_v10  ;;  %v2672_v10 = vld [vmem:[%s3874_s13 + $0xc0] sm:$0xff] }
 0x558   : > { %1984 = vmatpush.msra.mxu3 %v2600_v11  ;;  %2116 = vmatpush.msrb.mxu1 %v2619_v63  ;;  %v2614_v11 = vld [vmem:[%s3872_s11 + $0x1a8] sm:$0xff]  ;;  %v2284_v63 = vld [vmem:[%s3874_s13 + $0x50] sm:$0xff] }
 0x559   : > { %2142 = vmatpush.msrb.mxu0 %v2629_v13  ;;  %v2280_v13 = vld [vmem:[%s3874_s13 + $0x30] sm:$0xff] }
 0x55a   : > { %1985 = vmatpush.msra.mxu3 %v2599_v14  ;;  %2117 = vmatpush.msrb.mxu1 %v2618_v1  ;;  %v2612_v14 = vld [vmem:[%s3872_s11 + $0x198] sm:$0xff]  ;;  %v2674_v1 = vld [vmem:[%s3874_s13 + $0xd0] sm:$0xff] }
 0x55b   : > { %2575 = vmatmul.msk.f32.vlgmr.msrb.gmra.mxu3 %vm1807_vm0, %v2573_v51  ;;  %v1876_v51 = vld [vmem:[%s3872_s11 + $0x98] sm:$0xff]  ;;  %2143 = vmatpush.msrb.mxu0 %v2628_v16 }
 0x55c   : > { %1986 = vmatpush.msra.mxu3 %v2598_v22  ;;  %2030 = vmatpush.msra.mxu2 %v1876_v51  ;;  %v2626_v22 = vld [vmem:[%s3872_s11 + $0x208] sm:$0xff]  ;;  %v2679_v51 = vld [vmem:[%s3874_s13 + $0xf8] sm:$0xff] }
 0x55d   : > { %2118 = vmatpush.msrb.mxu1 %v2617_v2  ;;  %2144 = vmatpush.msrb.mxu0 %v2627_v19  ;;  %v2279_v19 = vld [vmem:[%s3874_s13 + $0x28] sm:$0xff] }
 0x55e   : > { %1987 = vmatpush.msra.mxu3 %v2597_v25  ;;  %2031 = vmatpush.msra.mxu2 %v1875_v55  ;;  %v2609_v25 = vld [vmem:[%s3872_s11 + $0x180] sm:$0xff] }
 0x55f   : > { %2119 = vmatpush.msrb.mxu1 %v2616_v6  ;;  %2145 = vmatpush.msrb.mxu0 %v2626_v22  ;;  %v2283_v6 = vld [vmem:[%s3874_s13 + $0x48] sm:$0xff]  ;;  %v2278_v22 = vld [vmem:[%s3874_s13 + $0x20] sm:$0xff] }
 0x560   : > { %1988 = vmatpush.msra.mxu3 %v2596_v26  ;;  %2032 = vmatpush.msra.mxu2 %v1874_v58  ;;  %v2653_v26 = vld [vmem:[%s3872_s11 + $0x2b0] sm:$0xff]  ;;  %v2676_v58 = vld [vmem:[%s3874_s13 + $0xe0] sm:$0xff] }
 0x561   : > { %2146 = vmatpush.msrb.mxu0 %v2625_v17  ;;  %v2276_v17 = vld [vmem:[%s3874_s13 + $0x10] sm:$0xff] }
 0x562   : > { %1989 = vmatpush.msra.mxu3 %v2595_v28  ;;  %2033 = vmatpush.msra.mxu2 %v1873_v60  ;;  %v2650_v28 = vld [vmem:[%s3872_s11 + $0x298] sm:$0xff] }
 0x564   : > { %1990 = vmatpush.msra.mxu3 %v2594_v31  ;;  %v2648_v31 = vld [vmem:[%s3872_s11 + $0x288] sm:$0xff] }
 0x565   : > { %2602 = vmatmul.msk.f32.vlgmr.msra.gmra.mxu3 %vm1951_vm2, %v1923_v33 }
 0x566   : > { %2605 = vmatpush.msk.msrb.mxu3 %vm665_vm5, %v3409_v9 }
 0x568   : > { %2607 = vmatpush.msk.msra.mxu3 %vm665_vm5, %v3394_v52 }
 0x56d   : > { %2606 = vmatmul.msk.f32.vlgmr.msrb.gmra.mxu3 %vm1807_vm0, %v2604_v40 }
 0x56e   : > { %2635 = vmatpush.msk.msrb.mxu3 %vm665_vm5, %v3409_v9  ;;  %v2615_v9 = vld [vmem:[%s3872_s11 + $0x1b0] sm:$0xff] }
 0x56f   : > { %2120 = vmatpush.msrb.mxu1 %v2615_v9  ;;  %v2282_v9 = vld [vmem:[%s3874_s13 + $0x40] sm:$0xff] }
 0x571   : > { %2121 = vmatpush.msrb.mxu1 %v2614_v11  ;;  %v2281_v11 = vld [vmem:[%s3874_s13 + $0x38] sm:$0xff] }
 0x573   : > { %2122 = vmatpush.msrb.mxu1 %v2613_v12  ;;  %v2671_v12 = vld [vmem:[%s3874_s13 + $0xb8] sm:$0xff] }
 0x575   : > { %2608 = vmatmul.msk.f32.vlgmr.msra.gmra.mxu3 %vm1807_vm0, %v2604_v40  ;;  %2123 = vmatpush.msrb.mxu1 %v2612_v14  ;;  %v2643_v40 = vld [vmem:[%s3872_s11 + $0x260] sm:$0xff]  ;;  %v2670_v14 = vld [vmem:[%s3874_s13 + $0xb0] sm:$0xff] }
 0x576   : > { %2225 = vmatpush.msra.mxu3 %v2654_v18  ;;  %v2666_v18 = vld [vmem:[%s3874_s13 + $0x90] sm:$0xff] }
 0x577   : > { %2124 = vmatpush.msrb.mxu1 %v2611_v20  ;;  %v2669_v20 = vld [vmem:[%s3874_s13 + $0xa8] sm:$0xff] }
 0x578   : > { %2226 = vmatpush.msra.mxu3 %v2653_v26  ;;  %v2275_v26 = vld [vmem:[%s3874_s13 + $0x8] sm:$0xff] }
 0x579   : > { %2125 = vmatpush.msrb.mxu1 %v2610_v23  ;;  %v2668_v23 = vld [vmem:[%s3874_s13 + $0xa0] sm:$0xff] }
 0x57a   : > { %2227 = vmatpush.msra.mxu3 %v2652_v27  ;;  %v2665_v27 = vld [vmem:[%s3874_s13 + $0x88] sm:$0xff] }
 0x57b   : > { %2126 = vmatpush.msrb.mxu1 %v2609_v25  ;;  %v2667_v25 = vld [vmem:[%s3874_s13 + $0x98] sm:$0xff] }
 0x57d   : > { %2636 = vmatmul.msk.f32.vlgmr.msrb.gmra.mxu3 %vm1807_vm0, %v2634_v3  ;;  %2330 = vmatpush.msra.mxu1 %v2289_v50 }
 0x57f   : > { %2331 = vmatpush.msra.mxu1 %v2288_v53 }
 0x581   : > { %2332 = vmatpush.msra.mxu1 %v2287_v0 }
 0x583   : > { %2333 = vmatpush.msra.mxu1 %v2286_v57 }
 0x585   : > { %2334 = vmatpush.msra.mxu1 %v2285_v61 }
 0x587   : > { %2335 = vmatpush.msra.mxu1 %v2284_v63 }
 0x589   : > { %2336 = vmatpush.msra.mxu1 %v2283_v6 }
 0x58b   : > { %2337 = vmatpush.msra.mxu1 %v2282_v9 }
 0x58d   : > { %2338 = vmatpush.msra.mxu1 %v2281_v11 }
 0x58f   : > { %2339 = vmatpush.msra.mxu1 %v2280_v13 }
 0x591   : > { %2340 = vmatpush.msra.mxu1 %v2279_v19 }
 0x593   : > { %2341 = vmatpush.msra.mxu1 %v2278_v22 }
 0x5d6   : > { %v1834_v24 = vpop.f32.mrf.mxu3 }
 0x5d7   : > { %2014 = vmatmul.f32.vlgmr.msrb.gmra.mxu2 %v1834_v24  ;;  %v2277_v24 = vld [vmem:[%s3874_s13 + $0x18] sm:$0xff] }
 0x5d8   : > { %2637 = vmatpush.msk.msrb.mxu2 %vm665_vm5, %v3394_v52  ;;  %v2651_v52 = vld [vmem:[%s3872_s11 + $0x2a0] sm:$0xff]  ;;  %2342 = vmatpush.msra.mxu1 %v2277_v24 }
 0x5d9   : > { %2228 = vmatpush.msra.mxu3 %v2651_v52  ;;  %v2664_v52 = vld [vmem:[%s3874_s13 + $0x80] sm:$0xff] }
 0x5da   : > { %2343 = vmatpush.msra.mxu1 %v2276_v17 }
 0x5db   : > { %2229 = vmatpush.msra.mxu3 %v2650_v28 }
 0x5dc   : > { %2344 = vmatpush.msra.mxu1 %v2275_v26 }
 0x5dd   : > { %2230 = vmatpush.msra.mxu3 %v2649_v30 }
 0x5de   : > { %v1903_v29 = vpop.f32.mrf.mxu3 }
 0x5df   : > { %2603 = vmatmul.msk.f32.vlgmr.msra.gmra.mxu2 %vm1951_vm2, %v1854_v21  ;;  %1971 = vmatmul.f32.vlgmr.msra.gmra.mxu0 %v1903_v29  ;;  %v2274_v21 = vld [vmem:[%s3874_s13] sm:$0xff] }
 0x5e0   : > { %2231 = vmatpush.msra.mxu3 %v2648_v31  ;;  %2253 = vmatpush.msra.mxu2 %v2662_v35 }
 0x5e1   : > { %2310 = vmatpush.msra.mxu0 %v2679_v51  ;;  %2345 = vmatpush.msra.mxu1 %v2274_v21 }
 0x5e2   : > { %2232 = vmatpush.msra.mxu3 %v2647_v5  ;;  %2254 = vmatpush.msra.mxu2 %v2661_v37  ;;  %v2749_v5 = vld [vmem:[%s3873_s12] ss:$0 sm:$0xff] }
 0x5e3   : > { %2311 = vmatpush.msra.mxu0 %v2678_v54 }
 0x5e4   : > { %2233 = vmatpush.msra.mxu3 %v2646_v34  ;;  %2255 = vmatpush.msra.mxu2 %v2660_v39 }
 0x5e5   : > { %2312 = vmatpush.msra.mxu0 %v2677_v56 }
 0x5e6   : > { %2234 = vmatpush.msra.mxu3 %v2645_v36  ;;  %2256 = vmatpush.msra.mxu2 %v2659_v15  ;;  %v2350_v15 = vld [vmem:[%s3875_s14] sm:$0x1] }
 0x5e7   : > { %2638 = vmatmul.msk.f32.vlgmr.msrb.gmra.mxu2 %vm1807_vm0, %v2634_v3  ;;  %2313 = vmatpush.msra.mxu0 %v2676_v58 }
 0x5e8   : > { %v1992_v32 = vpop.f32.mrf.mxu3  ;;  %2235 = vmatpush.msra.mxu3 %v2644_v38  ;;  %2257 = vmatpush.msra.mxu2 %v2658_v42 }
 0x5e9   : > { %2314 = vmatpush.msra.mxu0 %v2675_v62 }
 0x5ea   : > { %2236 = vmatpush.msra.mxu3 %v2643_v40  ;;  %2258 = vmatpush.msra.mxu2 %v2657_v44 }
 0x5eb   : > { %2315 = vmatpush.msra.mxu0 %v2674_v1 }
 0x5ec   : > { %2237 = vmatpush.msra.mxu3 %v2642_v41  ;;  %2259 = vmatpush.msra.mxu2 %v2656_v46 }
 0x5ed   : > { %2316 = vmatpush.msra.mxu0 %v2673_v7 }
 0x5ee   : > { %2238 = vmatpush.msra.mxu3 %v2641_v43  ;;  %2260 = vmatpush.msra.mxu2 %v2655_v48 }
 0x5ef   : > { %2317 = vmatpush.msra.mxu0 %v2672_v10 }
 0x5f0   : > { %v2060_v33 = vpop.f32.mrf.mxu3  ;;  %2239 = vmatpush.msra.mxu3 %v2640_v45 }
 0x5f1   : > { %2127 = vmatmul.f32.vlgmr.msrb.gmra.mxu1 %v2060_v33  ;;  %2318 = vmatpush.msra.mxu0 %v2671_v12 }
 0x5f2   : > { %2240 = vmatpush.msra.mxu3 %v2639_v47 }
 0x5f3   : > { %2319 = vmatpush.msra.mxu0 %v2670_v14 }
 0x5f5   : > { %2320 = vmatpush.msra.mxu0 %v2669_v20 }
 0x5f7   : > { %2321 = vmatpush.msra.mxu0 %v2668_v23 }
 0x5f8   : > { %v2080_v4 = vpop.f32.mrf.mxu3 }
 0x5f9   : > { %2633 = vmatmul.msk.f32.vlgmr.msrb.gmra.mxu0 %vm1951_vm2, %v2080_v4 }
 0x5fa   : > { %2322 = vmatpush.msra.mxu0 %v2667_v25 }
 0x5fc   : > { %2323 = vmatpush.msra.mxu0 %v2666_v18 }
 0x5fe   : > { %2324 = vmatpush.msra.mxu0 %v2665_v27 }
 0x600   : > { %v2174_v49 = vpop.f32.mrf.mxu3  ;;  %2325 = vmatpush.msra.mxu0 %v2664_v52 }
 0x601   : > { %2241 = vmatmul.f32.vlgmr.msra.gmra.mxu3 %v2174_v49 }
 0x65a   : > { %v2015_v55 = vpop.f32.mrf.mxu2 }
 0x65c   : > { %v1972_v59 = vpop.f32.mrf.mxu0 }
 0x65d   : > { %v1993_v60 = vadd.f32 %v1992_v32, %v1972_v59 }
 0x65f   : > { %v2016_v2 = vadd.f32 %v2015_v55, %v1993_v60 }
 0x662   : > { %v2035_v3 = vpop.f32.mrf.mxu2 }
 0x663   : > { %v2036_v8 = vadd.f32 %v2035_v3, %v2016_v2 }
 0x66a   : > { %v2194_v16 = vpop.f32.mrf.mxu2 }
 0x66b   : > { %2663 = vmatmul.msk.f32.vlgmr.msra.gmra.mxu2 %vm1951_vm2, %v2194_v16 }
 0x66e   : > { %v2128_v28 = vpop.f32.mrf.mxu1 }
 0x676   : > { %v2148_v29 = vpop.f32.mrf.mxu0 }
 0x677   : > { %v2149_v30 = vadd.f32 %v2148_v29, %v2128_v28 }
 0x679   : > { %v2151_v33 = vadd.f32 %v2149_v30, %v2036_v8 }
 0x684   : > { %v2242_v31 = vpop.f32.mrf.mxu3 }
 0x6ee   : > { %v2262_v32 = vpop.f32.mrf.mxu2 }
 0x6ef   : > { %v2263_v4 = vadd.f32 %v2262_v32, %v2242_v31 }
 0x6f1   : > { %v2265_v34 = vadd.f32 %v2263_v4, %v2151_v33 }
 0x6f3   : > { %v2270_v35 = vadd.f32 %v2749_v5, %v2265_v34 }
 0x6f5   : > { %vm2271_vm3 = vcmp.ge.f32.partialorder %v2270_v35, 0.0  ;;  %v2272_v36 = vmul.f32 0.2, %v2270_v35 }
 0x6f7   : > { %v2273_v37 = vsel %vm2271_vm3, %v2270_v35, %v2272_v36 }
 0x6f8   : > { %v2308_v38 = vrot.slane %v2273_v37, 1  ;;  %2346 = vmatmul.f32.vlgmr.msra.gmra.mxu1 %v2273_v37 }
 0x6fa   : > { %2326 = vmatmul.f32.vlgmr.msra.gmra.mxu0 %v2308_v38 }
 0x775   : > { %v2347_v39 = vpop.f32.mrf.mxu1 }
 0x777   : > { %v2327_v40 = vpop.f32.mrf.mxu0 }
 0x778   : > { %v2348_v41 = vadd.f32 %v2347_v39, %v2327_v40 }
 0x77a   : > { %v2351_v42 = vadd.f32 %v2350_v15, %v2348_v41 }
 0x77c   : > { %2353 = vst.msk [vmem:[%s520_s16] sm:$0x1] %vm2352_vm4, %v2351_v42 }
 0x77d   : > { %2837 = shalt.err (!%p2834_p8)
}
 0x77e   : > { %2691 = dma.vmem_to_hbm [thread:$0]  (%p3005_p5), %s2366_s18, 16, %s2368_s20, %s2355_s21  }
 0x77f PF: > { %s3894_s29 = sld [smem:[#allocation17_spill]] }
 0x780   : > { %s3895_s26 = sld [smem:[#allocation15_spill]] }
 0x785   : > { %p2708_p9 = scmp.ge.s32.totalorder %s3894_s29, 2 }
 0x786   : > { %s2379_s0 = sand.u32 1, %s3895_s26  }
 0x787   : > { %p2701_p10 = pnand %p2708_p9, %p3009_p6  ;;  %s2380_s27 = scalar_lea.sflag [#allocation8], %s2379_s0 }
 0x789   : > { %p2702_p11 = pneg %p2701_p10 }
 0x78b   : > { %2863 = dma.done.wait (%p2702_p11), %s2380_s27, 16  }
 0x78c   : > { %2865 = vsyncadd (%p2702_p11), %s2380_s27, 4294967280  ;;  %s3897_s21 = sld [smem:[#allocation18_spill]]  ;;  %s3900_s18 = smov %s2872_s19 }
 0x78d   : > { %s3898_s24 = sld [smem:[#allocation16_spill]] }
 0x78e   : > { %s3899_s20 = sld [smem:[#allocation19_spill]] }
 0x792   : > { %p27_p12 = scmp.ge.s32.totalorder %s3897_s21, 4  }
 0x793   : > { %s3901_s19 = smov %s3898_s24 }
 0x794   :  { %29 = sbr.rel (!%p27_p12) target bundleno = 7 (0x7), region = 149 }
 0x799   :  { %2385 = vsyncpa [#allocation7], 1 }
 0x79a   :  { %2387 = vsyncpa [#allocation7 + $0x1], 1 }
 0x79b   :  { %2388 = vsyncpa [#allocation10], 1 }
 0x79c   :  { %2389 = vsyncpa [#allocation8], 1 }
 0x79d   :  { %2391 = vsyncpa [#allocation8 + $0x1], 1 }

</bundles_post_ra>
